<compile_context>
chip_gen: v6e
topology: v6e:2x2x1
jax: 0.10.0
libtpu: 0.0.40
codegen_flags: <defaults>
</compile_context>

<pallas_src>
import math

import numpy as np
import jax
import jax.numpy as jnp
from jax.experimental import pallas as pl
from jax.experimental.pallas import tpu as pltpu

EPS = 1e-5  # nn.BatchNorm2d default


# ----------------------------- in-kernel helpers ----------------------------

def _bn_relu(x):
    # x: (C, P) f32, channels on sublanes, flattened (n, h, w) on lanes.
    # Training-mode BatchNorm2d (batch stats, biased var, affine=False) + ReLU.
    # Variance via E[x^2] - mean^2: the two lane reductions are independent
    # (issue concurrently on the XLU); clamp at 0 before rsqrt.
    p_inv = 1.0 / x.shape[1]
    mean = jnp.sum(x, axis=1, keepdims=True) * p_inv
    ex2 = jnp.sum(x * x, axis=1, keepdims=True) * p_inv
    var = jnp.maximum(ex2 - mean * mean, 0.0)
    scale = jax.lax.rsqrt(var + EPS)              # > 0, so it commutes with ReLU
    return jnp.maximum(x - mean, 0.0) * scale


def _conv3x3(x, w_mat, mask_ref, width, p):
    # 3x3 / stride 1 / pad 1 conv on the lane-flattened (n, h, w) layout.
    #   x:        (Cin, P) f32 with P = batch*h*w
    #   w_mat:    (Cout, 9*Cin) bf16, columns ordered (tap, ci), tap = kh*3+kw
    #   mask_ref: (9, P) f32 0/1 precomputed tap-validity masks (zero padding;
    #             also kills the circular wrap of the roll across image/batch
    #             boundaries).
    # Taps are gathered with pltpu.roll along lanes; pairs of taps are cast to
    # bf16 as they are produced (tile-aligned 16-row bf16 pieces) to keep the
    # live-vreg footprint low at P=512.
    bf16 = jnp.bfloat16
    offsets = [(dh, dw) for dh in (-1, 0, 1) for dw in (-1, 0, 1)]

    def tap(t):
        dh, dw = offsets[t]
        d = dh * width + dw
        if d == 0:
            return x                               # centre tap: mask is all-ones
        shifted = pltpu.roll(x, (-d) % p, axis=1)
        return shifted * mask_ref[t:t + 1, :]

    pieces = []
    for g in range(4):                             # taps (0,1), (2,3), (4,5), (6,7)
        pair = jnp.concatenate([tap(2 * g), tap(2 * g + 1)], axis=0)
        pieces.append(pair.astype(bf16))           # (2*Cin, P) bf16, tile-aligned
    pieces.append(tap(8).astype(bf16))             # trailing (Cin, P) bf16
    slab = jnp.concatenate(pieces, axis=0)         # (9*Cin, P) bf16
    return jnp.dot(w_mat, slab, preferred_element_type=jnp.float32)


def _make_fused_kernel(batch, nz, ndf, num_blocks):
    """Entire ResnetG forward as one VMEM-resident, grid-less kernel."""

    def kernel(zb_ref, wrep_ref, *args):
        # args = [U_0, W1_0, W2_0, M_0, ..., U_{B-1}, W1_{B-1}, W2_{B-1},
        #         M_{B-1}, Wlast, out_ref]
        *w_refs, out_ref = args
        bf16 = jnp.bfloat16

        # ---- firstConv: ConvTranspose2d(nz, ndf, 4, 1, 0) on (batch, nz, 1, 1)
        #   h[co, n*16+p] = sum_ci z[n, ci] * Wfirst[ci, co, p]
        # zb is z pre-broadcast to (nz, batch*16); wrep is the weight
        # lane-replicated per sample -> nz vectorized FMAs, no scratch, no
        # masked partial stores.
        zb = zb_ref[...]                                  # (nz, batch*16) f32
        h = zb[0:1, :] * wrep_ref[0]                      # (ndf, batch*16) f32
        for ci in range(1, nz):
            h = h + zb[ci:ci + 1, :] * wrep_ref[ci]

        hh = ww = 4
        for b in range(num_blocks):
            u_ref, w1_ref, w2_ref, m_ref = w_refs[4 * b: 4 * b + 4]
            hd, wd = 2 * hh, 2 * ww
            pd = batch * hd * wd
            # Fused bypass + main-path nearest-2x upsample: ONE MXU dot of the
            # stacked (2*ndf, P_in) operand with U, split afterwards.
            stacked = jnp.concatenate([h, _bn_relu(h)], axis=0).astype(bf16)
            up = jnp.dot(stacked, u_ref[...],
                         preferred_element_type=jnp.float32)  # (2*ndf, P_out)
            skip = up[:ndf]                               # Upsample(x)   (bypass)
            t = up[ndf:]                                  # Upsample(BN+ReLU(x))
            t = _conv3x3(t, w1_ref[...], m_ref, wd, pd)
            t = _bn_relu(t)
            h = _conv3x3(t, w2_ref[...], m_ref, wd, pd) + skip
            hh, ww = hd, wd

        # trailing BN + ReLU, lastConv (3x3), tanh — still VMEM-resident.
        # lastConv runs at the final resolution -> reuse the last block's mask.
        m_last = w_refs[4 * num_blocks - 1]
        y = _conv3x3(_bn_relu(h), w_refs[4 * num_blocks][...], m_last,
                     ww, batch * hh * ww)
        out_ref[...] = jnp.tanh(y)                        # (nc, batch*H*W)

    return kernel


# --------------------- init-time parameter / layout prep --------------------

def subnet_mask(scores, k):
    # GetSubnet.forward semantics: keep top-k fraction by |score| -> 1, rest 0
    a = jnp.abs(scores).reshape(-1)
    j = int((1 - k) * a.size)
    idx = jnp.argsort(a)
    return jnp.zeros_like(a).at[idx[j:]].set(1.0).reshape(scores.shape)


def masked_conv_weight(kw, ks, shape, fan_in, sparsity):
    std = math.sqrt(2.0 / fan_in)  # kaiming-normal style ("K_Normal")
    w = std * jax.random.normal(kw, shape, dtype=jnp.float32)
    scores = jax.random.uniform(ks, shape, minval=-0.1, maxval=0.1,
                                dtype=jnp.float32)
    return w * subnet_mask(scores, sparsity)


def _w3x3_to_mat(w):
    # torch conv weight (Cout, Cin, 3, 3) -> (Cout, 9*Cin),
    # column index = (kh*3 + kw)*Cin + ci  (matches the in-kernel tap order)
    cout = w.shape[0]
    return jnp.transpose(w, (0, 2, 3, 1)).reshape(cout, -1)


def _upsample_matrix(batch, h, w):
    # nearest 2x upsample of the lane-flattened (n, h, w) axis as a 0/1 matmul
    hd, wd = 2 * h, 2 * w
    pd = np.arange(batch * hd * wd)
    n = pd // (hd * wd)
    r = pd % (hd * wd)
    hh = r // wd
    ww = r % wd
    ps = n * h * w + (hh // 2) * w + (ww // 2)
    u = np.zeros((batch * h * w, batch * hd * wd), np.float32)
    u[ps, pd] = 1.0
    return jnp.asarray(u, dtype=jnp.bfloat16)


def _tap_masks(batch, h, w):
    # (9, batch*h*w) 0/1 tap-validity masks for the roll-based 3x3 gather
    # (precomputed once per spatial resolution; review item 2).
    p = batch * h * w
    lane = np.arange(p)
    col = lane % w
    row = (lane // w) % h
    rows_out = []
    for dh in (-1, 0, 1):
        for dw in (-1, 0, 1):
            valid = ((row + dh >= 0) & (row + dh < h) &
                     (col + dw >= 0) & (col + dw < w))
            rows_out.append(valid.astype(np.float32))
    return jnp.asarray(np.stack(rows_out, axis=0))


def init_params(key, batch, nz, nc, ndf, num_blocks, sparsity):
    keys = jax.random.split(key, 2 * (2 + 2 * num_blocks))
    ki = iter(keys)
    # firstConv: ConvTranspose2d weight (nz, ndf, 4, 4), bias=False.
    # Lane-replicated per sample -> (nz, ndf, batch*16) so the in-kernel
    # firstConv is pure vectorized FMAs (review item 1).
    w_first = masked_conv_weight(next(ki), next(ki), (nz, ndf, 4, 4),
                                 fan_in=nz * 16, sparsity=sparsity)
    w_first_rep = jnp.tile(w_first.reshape(nz, ndf, 16), (1, 1, batch))
    blocks = []
    h = w = 4
    for _ in range(num_blocks):
        w1 = masked_conv_weight(next(ki), next(ki), (ndf, ndf, 3, 3),
                                fan_in=ndf * 9, sparsity=sparsity)
        w2 = masked_conv_weight(next(ki), next(ki), (ndf, ndf, 3, 3),
                                fan_in=ndf * 9, sparsity=sparsity)
        blocks.append((_upsample_matrix(batch, h, w),
                       _w3x3_to_mat(w1).astype(jnp.bfloat16),
                       _w3x3_to_mat(w2).astype(jnp.bfloat16),
                       _tap_masks(batch, 2 * h, 2 * w)))
        h, w = 2 * h, 2 * w
    # lastConv: Conv2d(ndf, nc, 3, pad=1), bias=False
    w_last = masked_conv_weight(next(ki), next(ki), (nc, ndf, 3, 3),
                                fan_in=ndf * 9, sparsity=sparsity)
    return {
        "first_rep": w_first_rep.astype(jnp.float32),   # (nz, ndf, batch*16)
        "blocks": blocks,                               # (U, W1, W2, M) per block
        "last": _w3x3_to_mat(w_last).astype(jnp.bfloat16),
    }


# ----------------------------------- forward --------------------------------

def resnet_g_forward(x_nchw, params):
    batch = x_nchw.shape[0]
    nz, ndf = params["first_rep"].shape[0], params["first_rep"].shape[1]
    nc = params["last"].shape[0]
    num_blocks = len(params["blocks"])
    assert num_blocks >= 1
    hw = 4 * (2 ** num_blocks)
    p_out = batch * hw * hw

    # z pre-broadcast to the lane layout (nz, batch*16)  (review item 1).
    z = x_nchw.reshape(batch, nz)
    z_bcast = jnp.repeat(jnp.transpose(z), 16, axis=1)

    flat_w = []
    for (u, w1, w2, m) in params["blocks"]:
        flat_w += [u, w1, w2, m]
    flat_w.append(params["last"])

    vmem = pl.BlockSpec(memory_space=pltpu.MemorySpace.VMEM)

    out_flat = pl.pallas_call(
        _make_fused_kernel(batch, nz, ndf, num_blocks),
        out_shape=jax.ShapeDtypeStruct((nc, p_out), jnp.float32),
        in_specs=[vmem, vmem] + [vmem] * len(flat_w),
        out_specs=vmem,
    )(z_bcast, params["first_rep"], *flat_w)

    # (nc, batch, H, W) -> NCHW to match the torch module exactly
    return jnp.transpose(out_flat.reshape(nc, batch, hw, hw), (1, 0, 2, 3))


if __name__ == "__main__":
    BATCH, NZ, NC, NDF, IMAGE_SIZE = 2, 8, 3, 8, 16
    num_blocks = int(math.log(IMAGE_SIZE, 2)) - 2   # 2 upsample blocks: 4->8->16

    key = jax.random.PRNGKey(0)
    kx, kp = jax.random.split(key)
    x = jax.random.normal(kx, (BATCH, NZ, 1, 1), dtype=jnp.float32)
    params = init_params(kp, BATCH, NZ, NC, NDF, num_blocks, sparsity=0.5)

    fwd = jax.jit(resnet_g_forward)
    out = fwd(x, params)
    jax.block_until_ready(out)

    assert out.shape == (BATCH, NC, IMAGE_SIZE, IMAGE_SIZE), out.shape
    assert bool(jnp.all(jnp.isfinite(out)))
    assert bool(jnp.all(jnp.abs(out) <= 1.0))       # tanh range
    print("KERNEL_OK")
</pallas_src>

<mosaic_0001>
module attributes {stable_mosaic.version = 11 : i64} {
  func.func @kernel(%arg0: memref<8x32xf32, #tpu.memory_space<vmem>>, %arg1: memref<8x8x32xf32, #tpu.memory_space<vmem>>, %arg2: memref<32x128xbf16, #tpu.memory_space<vmem>>, %arg3: memref<8x72xbf16, #tpu.memory_space<vmem>>, %arg4: memref<8x72xbf16, #tpu.memory_space<vmem>>, %arg5: memref<9x128xf32, #tpu.memory_space<vmem>>, %arg6: memref<128x512xbf16, #tpu.memory_space<vmem>>, %arg7: memref<8x72xbf16, #tpu.memory_space<vmem>>, %arg8: memref<8x72xbf16, #tpu.memory_space<vmem>>, %arg9: memref<9x512xf32, #tpu.memory_space<vmem>>, %arg10: memref<3x72xbf16, #tpu.memory_space<vmem>>, %arg11: memref<3x512xf32, #tpu.memory_space<vmem>>) attributes {dimension_semantics = [], scalar_prefetch = 0 : i64, scratch_operands = 0 : i64, tpu.core_type = #tpu.core_type<tc>} {
    %c0 = arith.constant 0 : index
    %c0_0 = arith.constant 0 : index
    %0 = vector.load %arg0[%c0, %c0_0] : memref<8x32xf32, #tpu.memory_space<vmem>>, vector<8x32xf32>
    %1 = vector.extract_strided_slice %0 {offsets = [0, 0], sizes = [1, 32], strides = [1, 1]} : vector<8x32xf32> to vector<1x32xf32>
    %c0_1 = arith.constant 0 : index
    %c0_2 = arith.constant 0 : index
    %c0_3 = arith.constant 0 : index
    %2 = vector.load %arg1[%c0_1, %c0_2, %c0_3] : memref<8x8x32xf32, #tpu.memory_space<vmem>>, vector<1x8x32xf32>
    %3 = vector.shape_cast %2 : vector<1x8x32xf32> to vector<8x32xf32>
    %4 = vector.broadcast %1 : vector<1x32xf32> to vector<8x32xf32>
    %5 = arith.mulf %4, %3 : vector<8x32xf32>
    %6 = vector.extract_strided_slice %0 {offsets = [1, 0], sizes = [1, 32], strides = [1, 1]} : vector<8x32xf32> to vector<1x32xf32>
    %c1 = arith.constant 1 : index
    %c0_4 = arith.constant 0 : index
    %c0_5 = arith.constant 0 : index
    %7 = vector.load %arg1[%c1, %c0_4, %c0_5] : memref<8x8x32xf32, #tpu.memory_space<vmem>>, vector<1x8x32xf32>
    %8 = vector.shape_cast %7 : vector<1x8x32xf32> to vector<8x32xf32>
    %9 = vector.broadcast %6 : vector<1x32xf32> to vector<8x32xf32>
    %10 = arith.mulf %9, %8 : vector<8x32xf32>
    %11 = arith.addf %5, %10 : vector<8x32xf32>
    %12 = vector.extract_strided_slice %0 {offsets = [2, 0], sizes = [1, 32], strides = [1, 1]} : vector<8x32xf32> to vector<1x32xf32>
    %c2 = arith.constant 2 : index
    %c0_6 = arith.constant 0 : index
    %c0_7 = arith.constant 0 : index
    %13 = vector.load %arg1[%c2, %c0_6, %c0_7] : memref<8x8x32xf32, #tpu.memory_space<vmem>>, vector<1x8x32xf32>
    %14 = vector.shape_cast %13 : vector<1x8x32xf32> to vector<8x32xf32>
    %15 = vector.broadcast %12 : vector<1x32xf32> to vector<8x32xf32>
    %16 = arith.mulf %15, %14 : vector<8x32xf32>
    %17 = arith.addf %11, %16 : vector<8x32xf32>
    %18 = vector.extract_strided_slice %0 {offsets = [3, 0], sizes = [1, 32], strides = [1, 1]} : vector<8x32xf32> to vector<1x32xf32>
    %c3 = arith.constant 3 : index
    %c0_8 = arith.constant 0 : index
    %c0_9 = arith.constant 0 : index
    %19 = vector.load %arg1[%c3, %c0_8, %c0_9] : memref<8x8x32xf32, #tpu.memory_space<vmem>>, vector<1x8x32xf32>
    %20 = vector.shape_cast %19 : vector<1x8x32xf32> to vector<8x32xf32>
    %21 = vector.broadcast %18 : vector<1x32xf32> to vector<8x32xf32>
    %22 = arith.mulf %21, %20 : vector<8x32xf32>
    %23 = arith.addf %17, %22 : vector<8x32xf32>
    %24 = vector.extract_strided_slice %0 {offsets = [4, 0], sizes = [1, 32], strides = [1, 1]} : vector<8x32xf32> to vector<1x32xf32>
    %c4 = arith.constant 4 : index
    %c0_10 = arith.constant 0 : index
    %c0_11 = arith.constant 0 : index
    %25 = vector.load %arg1[%c4, %c0_10, %c0_11] : memref<8x8x32xf32, #tpu.memory_space<vmem>>, vector<1x8x32xf32>
    %26 = vector.shape_cast %25 : vector<1x8x32xf32> to vector<8x32xf32>
    %27 = vector.broadcast %24 : vector<1x32xf32> to vector<8x32xf32>
    %28 = arith.mulf %27, %26 : vector<8x32xf32>
    %29 = arith.addf %23, %28 : vector<8x32xf32>
    %30 = vector.extract_strided_slice %0 {offsets = [5, 0], sizes = [1, 32], strides = [1, 1]} : vector<8x32xf32> to vector<1x32xf32>
    %c5 = arith.constant 5 : index
    %c0_12 = arith.constant 0 : index
    %c0_13 = arith.constant 0 : index
    %31 = vector.load %arg1[%c5, %c0_12, %c0_13] : memref<8x8x32xf32, #tpu.memory_space<vmem>>, vector<1x8x32xf32>
    %32 = vector.shape_cast %31 : vector<1x8x32xf32> to vector<8x32xf32>
    %33 = vector.broadcast %30 : vector<1x32xf32> to vector<8x32xf32>
    %34 = arith.mulf %33, %32 : vector<8x32xf32>
    %35 = arith.addf %29, %34 : vector<8x32xf32>
    %36 = vector.extract_strided_slice %0 {offsets = [6, 0], sizes = [1, 32], strides = [1, 1]} : vector<8x32xf32> to vector<1x32xf32>
    %c6 = arith.constant 6 : index
    %c0_14 = arith.constant 0 : index
    %c0_15 = arith.constant 0 : index
    %37 = vector.load %arg1[%c6, %c0_14, %c0_15] : memref<8x8x32xf32, #tpu.memory_space<vmem>>, vector<1x8x32xf32>
    %38 = vector.shape_cast %37 : vector<1x8x32xf32> to vector<8x32xf32>
    %39 = vector.broadcast %36 : vector<1x32xf32> to vector<8x32xf32>
    %40 = arith.mulf %39, %38 : vector<8x32xf32>
    %41 = arith.addf %35, %40 : vector<8x32xf32>
    %42 = vector.extract_strided_slice %0 {offsets = [7, 0], sizes = [1, 32], strides = [1, 1]} : vector<8x32xf32> to vector<1x32xf32>
    %c7 = arith.constant 7 : index
    %c0_16 = arith.constant 0 : index
    %c0_17 = arith.constant 0 : index
    %43 = vector.load %arg1[%c7, %c0_16, %c0_17] : memref<8x8x32xf32, #tpu.memory_space<vmem>>, vector<1x8x32xf32>
    %44 = vector.shape_cast %43 : vector<1x8x32xf32> to vector<8x32xf32>
    %45 = vector.broadcast %42 : vector<1x32xf32> to vector<8x32xf32>
    %46 = arith.mulf %45, %44 : vector<8x32xf32>
    %47 = arith.addf %41, %46 : vector<8x32xf32>
    %cst = arith.constant dense<0.000000e+00> : vector<8xf32>
    %48 = vector.multi_reduction <add>, %47, %cst [1] : vector<8x32xf32> to vector<8xf32>
    %49 = vector.shape_cast %48 : vector<8xf32> to vector<8x1xf32>
    %cst_18 = arith.constant 3.125000e-02 : f32
    %50 = vector.broadcast %cst_18 : f32 to vector<8x1xf32>
    %51 = arith.mulf %49, %50 : vector<8x1xf32>
    %52 = arith.mulf %47, %47 : vector<8x32xf32>
    %cst_19 = arith.constant dense<0.000000e+00> : vector<8xf32>
    %53 = vector.multi_reduction <add>, %52, %cst_19 [1] : vector<8x32xf32> to vector<8xf32>
    %54 = vector.shape_cast %53 : vector<8xf32> to vector<8x1xf32>
    %cst_20 = arith.constant 3.125000e-02 : f32
    %55 = vector.broadcast %cst_20 : f32 to vector<8x1xf32>
    %56 = arith.mulf %54, %55 : vector<8x1xf32>
    %57 = arith.mulf %51, %51 : vector<8x1xf32>
    %58 = arith.subf %56, %57 : vector<8x1xf32>
    %cst_21 = arith.constant 0.000000e+00 : f32
    %59 = vector.broadcast %cst_21 : f32 to vector<8x1xf32>
    %60 = arith.maximumf %58, %59 : vector<8x1xf32>
    %cst_22 = arith.constant 9.99999974E-6 : f32
    %61 = vector.broadcast %cst_22 : f32 to vector<8x1xf32>
    %62 = arith.addf %60, %61 : vector<8x1xf32>
    %63 = math.rsqrt %62 : vector<8x1xf32>
    %64 = vector.broadcast %51 : vector<8x1xf32> to vector<8x32xf32>
    %65 = arith.subf %47, %64 : vector<8x32xf32>
    %cst_23 = arith.constant 0.000000e+00 : f32
    %66 = vector.broadcast %cst_23 : f32 to vector<8x32xf32>
    %67 = arith.maximumf %65, %66 : vector<8x32xf32>
    %68 = vector.broadcast %63 : vector<8x1xf32> to vector<8x32xf32>
    %69 = arith.mulf %67, %68 : vector<8x32xf32>
    %70 = tpu.concatenate %47, %69 in 0 : vector<8x32xf32>, vector<8x32xf32> -> vector<16x32xf32>
    %71 = arith.truncf %70 : vector<16x32xf32> to vector<16x32xbf16>
    %c0_24 = arith.constant 0 : index
    %c0_25 = arith.constant 0 : index
    %72 = vector.load %arg2[%c0_24, %c0_25] : memref<32x128xbf16, #tpu.memory_space<vmem>>, vector<32x128xbf16>
    %cst_26 = arith.constant dense<0.000000e+00> : vector<16x128xf32>
    %73 = tpu.matmul %71, %72, %cst_26 {dimension_numbers = #tpu.dot_dimension_numbers<[1], [0], [0], [1], [0, 0, 1, 1], [], []>} : vector<16x32xbf16>, vector<32x128xbf16>, vector<16x128xf32> -> vector<16x128xf32>
    %74 = vector.extract_strided_slice %73 {offsets = [0, 0], sizes = [8, 128], strides = [1, 1]} : vector<16x128xf32> to vector<8x128xf32>
    %75 = vector.extract_strided_slice %73 {offsets = [8, 0], sizes = [8, 128], strides = [1, 1]} : vector<16x128xf32> to vector<8x128xf32>
    %c0_27 = arith.constant 0 : index
    %c0_28 = arith.constant 0 : index
    %76 = vector.load %arg3[%c0_27, %c0_28] : memref<8x72xbf16, #tpu.memory_space<vmem>>, vector<8x72xbf16>
    %c9_i32 = arith.constant 9 : i32
    %77 = tpu.dynamic_rotate %75 by %c9_i32 dim 1 : vector<8x128xf32>, i32 -> vector<8x128xf32>
    %c0_29 = arith.constant 0 : index
    %c0_30 = arith.constant 0 : index
    %78 = vector.load %arg5[%c0_29, %c0_30] : memref<9x128xf32, #tpu.memory_space<vmem>>, vector<1x128xf32>
    %79 = vector.broadcast %78 : vector<1x128xf32> to vector<8x128xf32>
    %80 = arith.mulf %77, %79 : vector<8x128xf32>
    %c8_i32 = arith.constant 8 : i32
    %81 = tpu.dynamic_rotate %75 by %c8_i32 dim 1 : vector<8x128xf32>, i32 -> vector<8x128xf32>
    %c1_31 = arith.constant 1 : index
    %c0_32 = arith.constant 0 : index
    %82 = vector.load %arg5[%c1_31, %c0_32] : memref<9x128xf32, #tpu.memory_space<vmem>>, vector<1x128xf32>
    %83 = vector.broadcast %82 : vector<1x128xf32> to vector<8x128xf32>
    %84 = arith.mulf %81, %83 : vector<8x128xf32>
    %85 = tpu.concatenate %80, %84 in 0 : vector<8x128xf32>, vector<8x128xf32> -> vector<16x128xf32>
    %86 = arith.truncf %85 : vector<16x128xf32> to vector<16x128xbf16>
    %c7_i32 = arith.constant 7 : i32
    %87 = tpu.dynamic_rotate %75 by %c7_i32 dim 1 : vector<8x128xf32>, i32 -> vector<8x128xf32>
    %c2_33 = arith.constant 2 : index
    %c0_34 = arith.constant 0 : index
    %88 = vector.load %arg5[%c2_33, %c0_34] : memref<9x128xf32, #tpu.memory_space<vmem>>, vector<1x128xf32>
    %89 = vector.broadcast %88 : vector<1x128xf32> to vector<8x128xf32>
    %90 = arith.mulf %87, %89 : vector<8x128xf32>
    %c1_i32 = arith.constant 1 : i32
    %91 = tpu.dynamic_rotate %75 by %c1_i32 dim 1 : vector<8x128xf32>, i32 -> vector<8x128xf32>
    %c3_35 = arith.constant 3 : index
    %c0_36 = arith.constant 0 : index
    %92 = vector.load %arg5[%c3_35, %c0_36] : memref<9x128xf32, #tpu.memory_space<vmem>>, vector<1x128xf32>
    %93 = vector.broadcast %92 : vector<1x128xf32> to vector<8x128xf32>
    %94 = arith.mulf %91, %93 : vector<8x128xf32>
    %95 = tpu.concatenate %90, %94 in 0 : vector<8x128xf32>, vector<8x128xf32> -> vector<16x128xf32>
    %96 = arith.truncf %95 : vector<16x128xf32> to vector<16x128xbf16>
    %c127_i32 = arith.constant 127 : i32
    %97 = tpu.dynamic_rotate %75 by %c127_i32 dim 1 : vector<8x128xf32>, i32 -> vector<8x128xf32>
    %c5_37 = arith.constant 5 : index
    %c0_38 = arith.constant 0 : index
    %98 = vector.load %arg5[%c5_37, %c0_38] : memref<9x128xf32, #tpu.memory_space<vmem>>, vector<1x128xf32>
    %99 = vector.broadcast %98 : vector<1x128xf32> to vector<8x128xf32>
    %100 = arith.mulf %97, %99 : vector<8x128xf32>
    %101 = tpu.concatenate %75, %100 in 0 : vector<8x128xf32>, vector<8x128xf32> -> vector<16x128xf32>
    %102 = arith.truncf %101 : vector<16x128xf32> to vector<16x128xbf16>
    %c121_i32 = arith.constant 121 : i32
    %103 = tpu.dynamic_rotate %75 by %c121_i32 dim 1 : vector<8x128xf32>, i32 -> vector<8x128xf32>
    %c6_39 = arith.constant 6 : index
    %c0_40 = arith.constant 0 : index
    %104 = vector.load %arg5[%c6_39, %c0_40] : memref<9x128xf32, #tpu.memory_space<vmem>>, vector<1x128xf32>
    %105 = vector.broadcast %104 : vector<1x128xf32> to vector<8x128xf32>
    %106 = arith.mulf %103, %105 : vector<8x128xf32>
    %c120_i32 = arith.constant 120 : i32
    %107 = tpu.dynamic_rotate %75 by %c120_i32 dim 1 : vector<8x128xf32>, i32 -> vector<8x128xf32>
    %c7_41 = arith.constant 7 : index
    %c0_42 = arith.constant 0 : index
    %108 = vector.load %arg5[%c7_41, %c0_42] : memref<9x128xf32, #tpu.memory_space<vmem>>, vector<1x128xf32>
    %109 = vector.broadcast %108 : vector<1x128xf32> to vector<8x128xf32>
    %110 = arith.mulf %107, %109 : vector<8x128xf32>
    %111 = tpu.concatenate %106, %110 in 0 : vector<8x128xf32>, vector<8x128xf32> -> vector<16x128xf32>
    %112 = arith.truncf %111 : vector<16x128xf32> to vector<16x128xbf16>
    %c119_i32 = arith.constant 119 : i32
    %113 = tpu.dynamic_rotate %75 by %c119_i32 dim 1 : vector<8x128xf32>, i32 -> vector<8x128xf32>
    %c8 = arith.constant 8 : index
    %c0_43 = arith.constant 0 : index
    %114 = vector.load %arg5[%c8, %c0_43] : memref<9x128xf32, #tpu.memory_space<vmem>>, vector<1x128xf32>
    %115 = vector.broadcast %114 : vector<1x128xf32> to vector<8x128xf32>
    %116 = arith.mulf %113, %115 : vector<8x128xf32>
    %117 = arith.truncf %116 : vector<8x128xf32> to vector<8x128xbf16>
    %118 = tpu.concatenate %86, %96, %102, %112, %117 in 0 : vector<16x128xbf16>, vector<16x128xbf16>, vector<16x128xbf16>, vector<16x128xbf16>, vector<8x128xbf16> -> vector<72x128xbf16>
    %cst_44 = arith.constant dense<0.000000e+00> : vector<8x128xf32>
    %119 = tpu.matmul %76, %118, %cst_44 {dimension_numbers = #tpu.dot_dimension_numbers<[1], [0], [0], [1], [0, 0, 1, 1], [], []>} : vector<8x72xbf16>, vector<72x128xbf16>, vector<8x128xf32> -> vector<8x128xf32>
    %cst_45 = arith.constant dense<0.000000e+00> : vector<8xf32>
    %120 = vector.multi_reduction <add>, %119, %cst_45 [1] : vector<8x128xf32> to vector<8xf32>
    %121 = vector.shape_cast %120 : vector<8xf32> to vector<8x1xf32>
    %cst_46 = arith.constant 7.812500e-03 : f32
    %122 = vector.broadcast %cst_46 : f32 to vector<8x1xf32>
    %123 = arith.mulf %121, %122 : vector<8x1xf32>
    %124 = arith.mulf %119, %119 : vector<8x128xf32>
    %cst_47 = arith.constant dense<0.000000e+00> : vector<8xf32>
    %125 = vector.multi_reduction <add>, %124, %cst_47 [1] : vector<8x128xf32> to vector<8xf32>
    %126 = vector.shape_cast %125 : vector<8xf32> to vector<8x1xf32>
    %cst_48 = arith.constant 7.812500e-03 : f32
    %127 = vector.broadcast %cst_48 : f32 to vector<8x1xf32>
    %128 = arith.mulf %126, %127 : vector<8x1xf32>
    %129 = arith.mulf %123, %123 : vector<8x1xf32>
    %130 = arith.subf %128, %129 : vector<8x1xf32>
    %cst_49 = arith.constant 0.000000e+00 : f32
    %131 = vector.broadcast %cst_49 : f32 to vector<8x1xf32>
    %132 = arith.maximumf %130, %131 : vector<8x1xf32>
    %cst_50 = arith.constant 9.99999974E-6 : f32
    %133 = vector.broadcast %cst_50 : f32 to vector<8x1xf32>
    %134 = arith.addf %132, %133 : vector<8x1xf32>
    %135 = math.rsqrt %134 : vector<8x1xf32>
    %136 = vector.broadcast %123 : vector<8x1xf32> to vector<8x128xf32>
    %137 = arith.subf %119, %136 : vector<8x128xf32>
    %cst_51 = arith.constant 0.000000e+00 : f32
    %138 = vector.broadcast %cst_51 : f32 to vector<8x128xf32>
    %139 = arith.maximumf %137, %138 : vector<8x128xf32>
    %140 = vector.broadcast %135 : vector<8x1xf32> to vector<8x128xf32>
    %141 = arith.mulf %139, %140 : vector<8x128xf32>
    %c0_52 = arith.constant 0 : index
    %c0_53 = arith.constant 0 : index
    %142 = vector.load %arg4[%c0_52, %c0_53] : memref<8x72xbf16, #tpu.memory_space<vmem>>, vector<8x72xbf16>
    %c9_i32_54 = arith.constant 9 : i32
    %143 = tpu.dynamic_rotate %141 by %c9_i32_54 dim 1 : vector<8x128xf32>, i32 -> vector<8x128xf32>
    %c0_55 = arith.constant 0 : index
    %c0_56 = arith.constant 0 : index
    %144 = vector.load %arg5[%c0_55, %c0_56] : memref<9x128xf32, #tpu.memory_space<vmem>>, vector<1x128xf32>
    %145 = vector.broadcast %144 : vector<1x128xf32> to vector<8x128xf32>
    %146 = arith.mulf %143, %145 : vector<8x128xf32>
    %c8_i32_57 = arith.constant 8 : i32
    %147 = tpu.dynamic_rotate %141 by %c8_i32_57 dim 1 : vector<8x128xf32>, i32 -> vector<8x128xf32>
    %c1_58 = arith.constant 1 : index
    %c0_59 = arith.constant 0 : index
    %148 = vector.load %arg5[%c1_58, %c0_59] : memref<9x128xf32, #tpu.memory_space<vmem>>, vector<1x128xf32>
    %149 = vector.broadcast %148 : vector<1x128xf32> to vector<8x128xf32>
    %150 = arith.mulf %147, %149 : vector<8x128xf32>
    %151 = tpu.concatenate %146, %150 in 0 : vector<8x128xf32>, vector<8x128xf32> -> vector<16x128xf32>
    %152 = arith.truncf %151 : vector<16x128xf32> to vector<16x128xbf16>
    %c7_i32_60 = arith.constant 7 : i32
    %153 = tpu.dynamic_rotate %141 by %c7_i32_60 dim 1 : vector<8x128xf32>, i32 -> vector<8x128xf32>
    %c2_61 = arith.constant 2 : index
    %c0_62 = arith.constant 0 : index
    %154 = vector.load %arg5[%c2_61, %c0_62] : memref<9x128xf32, #tpu.memory_space<vmem>>, vector<1x128xf32>
    %155 = vector.broadcast %154 : vector<1x128xf32> to vector<8x128xf32>
    %156 = arith.mulf %153, %155 : vector<8x128xf32>
    %c1_i32_63 = arith.constant 1 : i32
    %157 = tpu.dynamic_rotate %141 by %c1_i32_63 dim 1 : vector<8x128xf32>, i32 -> vector<8x128xf32>
    %c3_64 = arith.constant 3 : index
    %c0_65 = arith.constant 0 : index
    %158 = vector.load %arg5[%c3_64, %c0_65] : memref<9x128xf32, #tpu.memory_space<vmem>>, vector<1x128xf32>
    %159 = vector.broadcast %158 : vector<1x128xf32> to vector<8x128xf32>
    %160 = arith.mulf %157, %159 : vector<8x128xf32>
    %161 = tpu.concatenate %156, %160 in 0 : vector<8x128xf32>, vector<8x128xf32> -> vector<16x128xf32>
    %162 = arith.truncf %161 : vector<16x128xf32> to vector<16x128xbf16>
    %c127_i32_66 = arith.constant 127 : i32
    %163 = tpu.dynamic_rotate %141 by %c127_i32_66 dim 1 : vector<8x128xf32>, i32 -> vector<8x128xf32>
    %c5_67 = arith.constant 5 : index
    %c0_68 = arith.constant 0 : index
    %164 = vector.load %arg5[%c5_67, %c0_68] : memref<9x128xf32, #tpu.memory_space<vmem>>, vector<1x128xf32>
    %165 = vector.broadcast %164 : vector<1x128xf32> to vector<8x128xf32>
    %166 = arith.mulf %163, %165 : vector<8x128xf32>
    %167 = tpu.concatenate %141, %166 in 0 : vector<8x128xf32>, vector<8x128xf32> -> vector<16x128xf32>
    %168 = arith.truncf %167 : vector<16x128xf32> to vector<16x128xbf16>
    %c121_i32_69 = arith.constant 121 : i32
    %169 = tpu.dynamic_rotate %141 by %c121_i32_69 dim 1 : vector<8x128xf32>, i32 -> vector<8x128xf32>
    %c6_70 = arith.constant 6 : index
    %c0_71 = arith.constant 0 : index
    %170 = vector.load %arg5[%c6_70, %c0_71] : memref<9x128xf32, #tpu.memory_space<vmem>>, vector<1x128xf32>
    %171 = vector.broadcast %170 : vector<1x128xf32> to vector<8x128xf32>
    %172 = arith.mulf %169, %171 : vector<8x128xf32>
    %c120_i32_72 = arith.constant 120 : i32
    %173 = tpu.dynamic_rotate %141 by %c120_i32_72 dim 1 : vector<8x128xf32>, i32 -> vector<8x128xf32>
    %c7_73 = arith.constant 7 : index
    %c0_74 = arith.constant 0 : index
    %174 = vector.load %arg5[%c7_73, %c0_74] : memref<9x128xf32, #tpu.memory_space<vmem>>, vector<1x128xf32>
    %175 = vector.broadcast %174 : vector<1x128xf32> to vector<8x128xf32>
    %176 = arith.mulf %173, %175 : vector<8x128xf32>
    %177 = tpu.concatenate %172, %176 in 0 : vector<8x128xf32>, vector<8x128xf32> -> vector<16x128xf32>
    %178 = arith.truncf %177 : vector<16x128xf32> to vector<16x128xbf16>
    %c119_i32_75 = arith.constant 119 : i32
    %179 = tpu.dynamic_rotate %141 by %c119_i32_75 dim 1 : vector<8x128xf32>, i32 -> vector<8x128xf32>
    %c8_76 = arith.constant 8 : index
    %c0_77 = arith.constant 0 : index
    %180 = vector.load %arg5[%c8_76, %c0_77] : memref<9x128xf32, #tpu.memory_space<vmem>>, vector<1x128xf32>
    %181 = vector.broadcast %180 : vector<1x128xf32> to vector<8x128xf32>
    %182 = arith.mulf %179, %181 : vector<8x128xf32>
    %183 = arith.truncf %182 : vector<8x128xf32> to vector<8x128xbf16>
    %184 = tpu.concatenate %152, %162, %168, %178, %183 in 0 : vector<16x128xbf16>, vector<16x128xbf16>, vector<16x128xbf16>, vector<16x128xbf16>, vector<8x128xbf16> -> vector<72x128xbf16>
    %cst_78 = arith.constant dense<0.000000e+00> : vector<8x128xf32>
    %185 = tpu.matmul %142, %184, %cst_78 {dimension_numbers = #tpu.dot_dimension_numbers<[1], [0], [0], [1], [0, 0, 1, 1], [], []>} : vector<8x72xbf16>, vector<72x128xbf16>, vector<8x128xf32> -> vector<8x128xf32>
    %186 = arith.addf %185, %74 : vector<8x128xf32>
    %cst_79 = arith.constant dense<0.000000e+00> : vector<8xf32>
    %187 = vector.multi_reduction <add>, %186, %cst_79 [1] : vector<8x128xf32> to vector<8xf32>
    %188 = vector.shape_cast %187 : vector<8xf32> to vector<8x1xf32>
    %cst_80 = arith.constant 7.812500e-03 : f32
    %189 = vector.broadcast %cst_80 : f32 to vector<8x1xf32>
    %190 = arith.mulf %188, %189 : vector<8x1xf32>
    %191 = arith.mulf %186, %186 : vector<8x128xf32>
    %cst_81 = arith.constant dense<0.000000e+00> : vector<8xf32>
    %192 = vector.multi_reduction <add>, %191, %cst_81 [1] : vector<8x128xf32> to vector<8xf32>
    %193 = vector.shape_cast %192 : vector<8xf32> to vector<8x1xf32>
    %cst_82 = arith.constant 7.812500e-03 : f32
    %194 = vector.broadcast %cst_82 : f32 to vector<8x1xf32>
    %195 = arith.mulf %193, %194 : vector<8x1xf32>
    %196 = arith.mulf %190, %190 : vector<8x1xf32>
    %197 = arith.subf %195, %196 : vector<8x1xf32>
    %cst_83 = arith.constant 0.000000e+00 : f32
    %198 = vector.broadcast %cst_83 : f32 to vector<8x1xf32>
    %199 = arith.maximumf %197, %198 : vector<8x1xf32>
    %cst_84 = arith.constant 9.99999974E-6 : f32
    %200 = vector.broadcast %cst_84 : f32 to vector<8x1xf32>
    %201 = arith.addf %199, %200 : vector<8x1xf32>
    %202 = math.rsqrt %201 : vector<8x1xf32>
    %203 = vector.broadcast %190 : vector<8x1xf32> to vector<8x128xf32>
    %204 = arith.subf %186, %203 : vector<8x128xf32>
    %cst_85 = arith.constant 0.000000e+00 : f32
    %205 = vector.broadcast %cst_85 : f32 to vector<8x128xf32>
    %206 = arith.maximumf %204, %205 : vector<8x128xf32>
    %207 = vector.broadcast %202 : vector<8x1xf32> to vector<8x128xf32>
    %208 = arith.mulf %206, %207 : vector<8x128xf32>
    %209 = tpu.concatenate %186, %208 in 0 : vector<8x128xf32>, vector<8x128xf32> -> vector<16x128xf32>
    %210 = arith.truncf %209 : vector<16x128xf32> to vector<16x128xbf16>
    %c0_86 = arith.constant 0 : index
    %c0_87 = arith.constant 0 : index
    %211 = vector.load %arg6[%c0_86, %c0_87] : memref<128x512xbf16, #tpu.memory_space<vmem>>, vector<128x512xbf16>
    %cst_88 = arith.constant dense<0.000000e+00> : vector<16x512xf32>
    %212 = tpu.matmul %210, %211, %cst_88 {dimension_numbers = #tpu.dot_dimension_numbers<[1], [0], [0], [1], [0, 0, 1, 1], [], []>} : vector<16x128xbf16>, vector<128x512xbf16>, vector<16x512xf32> -> vector<16x512xf32>
    %213 = vector.extract_strided_slice %212 {offsets = [0, 0], sizes = [8, 512], strides = [1, 1]} : vector<16x512xf32> to vector<8x512xf32>
    %214 = vector.extract_strided_slice %212 {offsets = [8, 0], sizes = [8, 512], strides = [1, 1]} : vector<16x512xf32> to vector<8x512xf32>
    %c0_89 = arith.constant 0 : index
    %c0_90 = arith.constant 0 : index
    %215 = vector.load %arg7[%c0_89, %c0_90] : memref<8x72xbf16, #tpu.memory_space<vmem>>, vector<8x72xbf16>
    %c17_i32 = arith.constant 17 : i32
    %216 = tpu.dynamic_rotate %214 by %c17_i32 dim 1 : vector<8x512xf32>, i32 -> vector<8x512xf32>
    %c0_91 = arith.constant 0 : index
    %c0_92 = arith.constant 0 : index
    %217 = vector.load %arg9[%c0_91, %c0_92] : memref<9x512xf32, #tpu.memory_space<vmem>>, vector<1x512xf32>
    %218 = vector.broadcast %217 : vector<1x512xf32> to vector<8x512xf32>
    %219 = arith.mulf %216, %218 : vector<8x512xf32>
    %c16_i32 = arith.constant 16 : i32
    %220 = tpu.dynamic_rotate %214 by %c16_i32 dim 1 : vector<8x512xf32>, i32 -> vector<8x512xf32>
    %c1_93 = arith.constant 1 : index
    %c0_94 = arith.constant 0 : index
    %221 = vector.load %arg9[%c1_93, %c0_94] : memref<9x512xf32, #tpu.memory_space<vmem>>, vector<1x512xf32>
    %222 = vector.broadcast %221 : vector<1x512xf32> to vector<8x512xf32>
    %223 = arith.mulf %220, %222 : vector<8x512xf32>
    %224 = tpu.concatenate %219, %223 in 0 : vector<8x512xf32>, vector<8x512xf32> -> vector<16x512xf32>
    %225 = arith.truncf %224 : vector<16x512xf32> to vector<16x512xbf16>
    %c15_i32 = arith.constant 15 : i32
    %226 = tpu.dynamic_rotate %214 by %c15_i32 dim 1 : vector<8x512xf32>, i32 -> vector<8x512xf32>
    %c2_95 = arith.constant 2 : index
    %c0_96 = arith.constant 0 : index
    %227 = vector.load %arg9[%c2_95, %c0_96] : memref<9x512xf32, #tpu.memory_space<vmem>>, vector<1x512xf32>
    %228 = vector.broadcast %227 : vector<1x512xf32> to vector<8x512xf32>
    %229 = arith.mulf %226, %228 : vector<8x512xf32>
    %c1_i32_97 = arith.constant 1 : i32
    %230 = tpu.dynamic_rotate %214 by %c1_i32_97 dim 1 : vector<8x512xf32>, i32 -> vector<8x512xf32>
    %c3_98 = arith.constant 3 : index
    %c0_99 = arith.constant 0 : index
    %231 = vector.load %arg9[%c3_98, %c0_99] : memref<9x512xf32, #tpu.memory_space<vmem>>, vector<1x512xf32>
    %232 = vector.broadcast %231 : vector<1x512xf32> to vector<8x512xf32>
    %233 = arith.mulf %230, %232 : vector<8x512xf32>
    %234 = tpu.concatenate %229, %233 in 0 : vector<8x512xf32>, vector<8x512xf32> -> vector<16x512xf32>
    %235 = arith.truncf %234 : vector<16x512xf32> to vector<16x512xbf16>
    %c511_i32 = arith.constant 511 : i32
    %236 = tpu.dynamic_rotate %214 by %c511_i32 dim 1 : vector<8x512xf32>, i32 -> vector<8x512xf32>
    %c5_100 = arith.constant 5 : index
    %c0_101 = arith.constant 0 : index
    %237 = vector.load %arg9[%c5_100, %c0_101] : memref<9x512xf32, #tpu.memory_space<vmem>>, vector<1x512xf32>
    %238 = vector.broadcast %237 : vector<1x512xf32> to vector<8x512xf32>
    %239 = arith.mulf %236, %238 : vector<8x512xf32>
    %240 = tpu.concatenate %214, %239 in 0 : vector<8x512xf32>, vector<8x512xf32> -> vector<16x512xf32>
    %241 = arith.truncf %240 : vector<16x512xf32> to vector<16x512xbf16>
    %c497_i32 = arith.constant 497 : i32
    %242 = tpu.dynamic_rotate %214 by %c497_i32 dim 1 : vector<8x512xf32>, i32 -> vector<8x512xf32>
    %c6_102 = arith.constant 6 : index
    %c0_103 = arith.constant 0 : index
    %243 = vector.load %arg9[%c6_102, %c0_103] : memref<9x512xf32, #tpu.memory_space<vmem>>, vector<1x512xf32>
    %244 = vector.broadcast %243 : vector<1x512xf32> to vector<8x512xf32>
    %245 = arith.mulf %242, %244 : vector<8x512xf32>
    %c496_i32 = arith.constant 496 : i32
    %246 = tpu.dynamic_rotate %214 by %c496_i32 dim 1 : vector<8x512xf32>, i32 -> vector<8x512xf32>
    %c7_104 = arith.constant 7 : index
    %c0_105 = arith.constant 0 : index
    %247 = vector.load %arg9[%c7_104, %c0_105] : memref<9x512xf32, #tpu.memory_space<vmem>>, vector<1x512xf32>
    %248 = vector.broadcast %247 : vector<1x512xf32> to vector<8x512xf32>
    %249 = arith.mulf %246, %248 : vector<8x512xf32>
    %250 = tpu.concatenate %245, %249 in 0 : vector<8x512xf32>, vector<8x512xf32> -> vector<16x512xf32>
    %251 = arith.truncf %250 : vector<16x512xf32> to vector<16x512xbf16>
    %c495_i32 = arith.constant 495 : i32
    %252 = tpu.dynamic_rotate %214 by %c495_i32 dim 1 : vector<8x512xf32>, i32 -> vector<8x512xf32>
    %c8_106 = arith.constant 8 : index
    %c0_107 = arith.constant 0 : index
    %253 = vector.load %arg9[%c8_106, %c0_107] : memref<9x512xf32, #tpu.memory_space<vmem>>, vector<1x512xf32>
    %254 = vector.broadcast %253 : vector<1x512xf32> to vector<8x512xf32>
    %255 = arith.mulf %252, %254 : vector<8x512xf32>
    %256 = arith.truncf %255 : vector<8x512xf32> to vector<8x512xbf16>
    %257 = tpu.concatenate %225, %235, %241, %251, %256 in 0 : vector<16x512xbf16>, vector<16x512xbf16>, vector<16x512xbf16>, vector<16x512xbf16>, vector<8x512xbf16> -> vector<72x512xbf16>
    %cst_108 = arith.constant dense<0.000000e+00> : vector<8x512xf32>
    %258 = tpu.matmul %215, %257, %cst_108 {dimension_numbers = #tpu.dot_dimension_numbers<[1], [0], [0], [1], [0, 0, 1, 1], [], []>} : vector<8x72xbf16>, vector<72x512xbf16>, vector<8x512xf32> -> vector<8x512xf32>
    %cst_109 = arith.constant dense<0.000000e+00> : vector<8xf32>
    %259 = vector.multi_reduction <add>, %258, %cst_109 [1] : vector<8x512xf32> to vector<8xf32>
    %260 = vector.shape_cast %259 : vector<8xf32> to vector<8x1xf32>
    %cst_110 = arith.constant 0.001953125 : f32
    %261 = vector.broadcast %cst_110 : f32 to vector<8x1xf32>
    %262 = arith.mulf %260, %261 : vector<8x1xf32>
    %263 = arith.mulf %258, %258 : vector<8x512xf32>
    %cst_111 = arith.constant dense<0.000000e+00> : vector<8xf32>
    %264 = vector.multi_reduction <add>, %263, %cst_111 [1] : vector<8x512xf32> to vector<8xf32>
    %265 = vector.shape_cast %264 : vector<8xf32> to vector<8x1xf32>
    %cst_112 = arith.constant 0.001953125 : f32
    %266 = vector.broadcast %cst_112 : f32 to vector<8x1xf32>
    %267 = arith.mulf %265, %266 : vector<8x1xf32>
    %268 = arith.mulf %262, %262 : vector<8x1xf32>
    %269 = arith.subf %267, %268 : vector<8x1xf32>
    %cst_113 = arith.constant 0.000000e+00 : f32
    %270 = vector.broadcast %cst_113 : f32 to vector<8x1xf32>
    %271 = arith.maximumf %269, %270 : vector<8x1xf32>
    %cst_114 = arith.constant 9.99999974E-6 : f32
    %272 = vector.broadcast %cst_114 : f32 to vector<8x1xf32>
    %273 = arith.addf %271, %272 : vector<8x1xf32>
    %274 = math.rsqrt %273 : vector<8x1xf32>
    %275 = vector.broadcast %262 : vector<8x1xf32> to vector<8x512xf32>
    %276 = arith.subf %258, %275 : vector<8x512xf32>
    %cst_115 = arith.constant 0.000000e+00 : f32
    %277 = vector.broadcast %cst_115 : f32 to vector<8x512xf32>
    %278 = arith.maximumf %276, %277 : vector<8x512xf32>
    %279 = vector.broadcast %274 : vector<8x1xf32> to vector<8x512xf32>
    %280 = arith.mulf %278, %279 : vector<8x512xf32>
    %c0_116 = arith.constant 0 : index
    %c0_117 = arith.constant 0 : index
    %281 = vector.load %arg8[%c0_116, %c0_117] : memref<8x72xbf16, #tpu.memory_space<vmem>>, vector<8x72xbf16>
    %c17_i32_118 = arith.constant 17 : i32
    %282 = tpu.dynamic_rotate %280 by %c17_i32_118 dim 1 : vector<8x512xf32>, i32 -> vector<8x512xf32>
    %c0_119 = arith.constant 0 : index
    %c0_120 = arith.constant 0 : index
    %283 = vector.load %arg9[%c0_119, %c0_120] : memref<9x512xf32, #tpu.memory_space<vmem>>, vector<1x512xf32>
    %284 = vector.broadcast %283 : vector<1x512xf32> to vector<8x512xf32>
    %285 = arith.mulf %282, %284 : vector<8x512xf32>
    %c16_i32_121 = arith.constant 16 : i32
    %286 = tpu.dynamic_rotate %280 by %c16_i32_121 dim 1 : vector<8x512xf32>, i32 -> vector<8x512xf32>
    %c1_122 = arith.constant 1 : index
    %c0_123 = arith.constant 0 : index
    %287 = vector.load %arg9[%c1_122, %c0_123] : memref<9x512xf32, #tpu.memory_space<vmem>>, vector<1x512xf32>
    %288 = vector.broadcast %287 : vector<1x512xf32> to vector<8x512xf32>
    %289 = arith.mulf %286, %288 : vector<8x512xf32>
    %290 = tpu.concatenate %285, %289 in 0 : vector<8x512xf32>, vector<8x512xf32> -> vector<16x512xf32>
    %291 = arith.truncf %290 : vector<16x512xf32> to vector<16x512xbf16>
    %c15_i32_124 = arith.constant 15 : i32
    %292 = tpu.dynamic_rotate %280 by %c15_i32_124 dim 1 : vector<8x512xf32>, i32 -> vector<8x512xf32>
    %c2_125 = arith.constant 2 : index
    %c0_126 = arith.constant 0 : index
    %293 = vector.load %arg9[%c2_125, %c0_126] : memref<9x512xf32, #tpu.memory_space<vmem>>, vector<1x512xf32>
    %294 = vector.broadcast %293 : vector<1x512xf32> to vector<8x512xf32>
    %295 = arith.mulf %292, %294 : vector<8x512xf32>
    %c1_i32_127 = arith.constant 1 : i32
    %296 = tpu.dynamic_rotate %280 by %c1_i32_127 dim 1 : vector<8x512xf32>, i32 -> vector<8x512xf32>
    %c3_128 = arith.constant 3 : index
    %c0_129 = arith.constant 0 : index
    %297 = vector.load %arg9[%c3_128, %c0_129] : memref<9x512xf32, #tpu.memory_space<vmem>>, vector<1x512xf32>
    %298 = vector.broadcast %297 : vector<1x512xf32> to vector<8x512xf32>
    %299 = arith.mulf %296, %298 : vector<8x512xf32>
    %300 = tpu.concatenate %295, %299 in 0 : vector<8x512xf32>, vector<8x512xf32> -> vector<16x512xf32>
    %301 = arith.truncf %300 : vector<16x512xf32> to vector<16x512xbf16>
    %c511_i32_130 = arith.constant 511 : i32
    %302 = tpu.dynamic_rotate %280 by %c511_i32_130 dim 1 : vector<8x512xf32>, i32 -> vector<8x512xf32>
    %c5_131 = arith.constant 5 : index
    %c0_132 = arith.constant 0 : index
    %303 = vector.load %arg9[%c5_131, %c0_132] : memref<9x512xf32, #tpu.memory_space<vmem>>, vector<1x512xf32>
    %304 = vector.broadcast %303 : vector<1x512xf32> to vector<8x512xf32>
    %305 = arith.mulf %302, %304 : vector<8x512xf32>
    %306 = tpu.concatenate %280, %305 in 0 : vector<8x512xf32>, vector<8x512xf32> -> vector<16x512xf32>
    %307 = arith.truncf %306 : vector<16x512xf32> to vector<16x512xbf16>
    %c497_i32_133 = arith.constant 497 : i32
    %308 = tpu.dynamic_rotate %280 by %c497_i32_133 dim 1 : vector<8x512xf32>, i32 -> vector<8x512xf32>
    %c6_134 = arith.constant 6 : index
    %c0_135 = arith.constant 0 : index
    %309 = vector.load %arg9[%c6_134, %c0_135] : memref<9x512xf32, #tpu.memory_space<vmem>>, vector<1x512xf32>
    %310 = vector.broadcast %309 : vector<1x512xf32> to vector<8x512xf32>
    %311 = arith.mulf %308, %310 : vector<8x512xf32>
    %c496_i32_136 = arith.constant 496 : i32
    %312 = tpu.dynamic_rotate %280 by %c496_i32_136 dim 1 : vector<8x512xf32>, i32 -> vector<8x512xf32>
    %c7_137 = arith.constant 7 : index
    %c0_138 = arith.constant 0 : index
    %313 = vector.load %arg9[%c7_137, %c0_138] : memref<9x512xf32, #tpu.memory_space<vmem>>, vector<1x512xf32>
    %314 = vector.broadcast %313 : vector<1x512xf32> to vector<8x512xf32>
    %315 = arith.mulf %312, %314 : vector<8x512xf32>
    %316 = tpu.concatenate %311, %315 in 0 : vector<8x512xf32>, vector<8x512xf32> -> vector<16x512xf32>
    %317 = arith.truncf %316 : vector<16x512xf32> to vector<16x512xbf16>
    %c495_i32_139 = arith.constant 495 : i32
    %318 = tpu.dynamic_rotate %280 by %c495_i32_139 dim 1 : vector<8x512xf32>, i32 -> vector<8x512xf32>
    %c8_140 = arith.constant 8 : index
    %c0_141 = arith.constant 0 : index
    %319 = vector.load %arg9[%c8_140, %c0_141] : memref<9x512xf32, #tpu.memory_space<vmem>>, vector<1x512xf32>
    %320 = vector.broadcast %319 : vector<1x512xf32> to vector<8x512xf32>
    %321 = arith.mulf %318, %320 : vector<8x512xf32>
    %322 = arith.truncf %321 : vector<8x512xf32> to vector<8x512xbf16>
    %323 = tpu.concatenate %291, %301, %307, %317, %322 in 0 : vector<16x512xbf16>, vector<16x512xbf16>, vector<16x512xbf16>, vector<16x512xbf16>, vector<8x512xbf16> -> vector<72x512xbf16>
    %cst_142 = arith.constant dense<0.000000e+00> : vector<8x512xf32>
    %324 = tpu.matmul %281, %323, %cst_142 {dimension_numbers = #tpu.dot_dimension_numbers<[1], [0], [0], [1], [0, 0, 1, 1], [], []>} : vector<8x72xbf16>, vector<72x512xbf16>, vector<8x512xf32> -> vector<8x512xf32>
    %325 = arith.addf %324, %213 : vector<8x512xf32>
    %cst_143 = arith.constant dense<0.000000e+00> : vector<8xf32>
    %326 = vector.multi_reduction <add>, %325, %cst_143 [1] : vector<8x512xf32> to vector<8xf32>
    %327 = vector.shape_cast %326 : vector<8xf32> to vector<8x1xf32>
    %cst_144 = arith.constant 0.001953125 : f32
    %328 = vector.broadcast %cst_144 : f32 to vector<8x1xf32>
    %329 = arith.mulf %327, %328 : vector<8x1xf32>
    %330 = arith.mulf %325, %325 : vector<8x512xf32>
    %cst_145 = arith.constant dense<0.000000e+00> : vector<8xf32>
    %331 = vector.multi_reduction <add>, %330, %cst_145 [1] : vector<8x512xf32> to vector<8xf32>
    %332 = vector.shape_cast %331 : vector<8xf32> to vector<8x1xf32>
    %cst_146 = arith.constant 0.001953125 : f32
    %333 = vector.broadcast %cst_146 : f32 to vector<8x1xf32>
    %334 = arith.mulf %332, %333 : vector<8x1xf32>
    %335 = arith.mulf %329, %329 : vector<8x1xf32>
    %336 = arith.subf %334, %335 : vector<8x1xf32>
    %cst_147 = arith.constant 0.000000e+00 : f32
    %337 = vector.broadcast %cst_147 : f32 to vector<8x1xf32>
    %338 = arith.maximumf %336, %337 : vector<8x1xf32>
    %cst_148 = arith.constant 9.99999974E-6 : f32
    %339 = vector.broadcast %cst_148 : f32 to vector<8x1xf32>
    %340 = arith.addf %338, %339 : vector<8x1xf32>
    %341 = math.rsqrt %340 : vector<8x1xf32>
    %342 = vector.broadcast %329 : vector<8x1xf32> to vector<8x512xf32>
    %343 = arith.subf %325, %342 : vector<8x512xf32>
    %cst_149 = arith.constant 0.000000e+00 : f32
    %344 = vector.broadcast %cst_149 : f32 to vector<8x512xf32>
    %345 = arith.maximumf %343, %344 : vector<8x512xf32>
    %346 = vector.broadcast %341 : vector<8x1xf32> to vector<8x512xf32>
    %347 = arith.mulf %345, %346 : vector<8x512xf32>
    %c0_150 = arith.constant 0 : index
    %c0_151 = arith.constant 0 : index
    %348 = vector.load %arg10[%c0_150, %c0_151] : memref<3x72xbf16, #tpu.memory_space<vmem>>, vector<3x72xbf16>
    %c17_i32_152 = arith.constant 17 : i32
    %349 = tpu.dynamic_rotate %347 by %c17_i32_152 dim 1 : vector<8x512xf32>, i32 -> vector<8x512xf32>
    %c0_153 = arith.constant 0 : index
    %c0_154 = arith.constant 0 : index
    %350 = vector.load %arg9[%c0_153, %c0_154] : memref<9x512xf32, #tpu.memory_space<vmem>>, vector<1x512xf32>
    %351 = vector.broadcast %350 : vector<1x512xf32> to vector<8x512xf32>
    %352 = arith.mulf %349, %351 : vector<8x512xf32>
    %c16_i32_155 = arith.constant 16 : i32
    %353 = tpu.dynamic_rotate %347 by %c16_i32_155 dim 1 : vector<8x512xf32>, i32 -> vector<8x512xf32>
    %c1_156 = arith.constant 1 : index
    %c0_157 = arith.constant 0 : index
    %354 = vector.load %arg9[%c1_156, %c0_157] : memref<9x512xf32, #tpu.memory_space<vmem>>, vector<1x512xf32>
    %355 = vector.broadcast %354 : vector<1x512xf32> to vector<8x512xf32>
    %356 = arith.mulf %353, %355 : vector<8x512xf32>
    %357 = tpu.concatenate %352, %356 in 0 : vector<8x512xf32>, vector<8x512xf32> -> vector<16x512xf32>
    %358 = arith.truncf %357 : vector<16x512xf32> to vector<16x512xbf16>
    %c15_i32_158 = arith.constant 15 : i32
    %359 = tpu.dynamic_rotate %347 by %c15_i32_158 dim 1 : vector<8x512xf32>, i32 -> vector<8x512xf32>
    %c2_159 = arith.constant 2 : index
    %c0_160 = arith.constant 0 : index
    %360 = vector.load %arg9[%c2_159, %c0_160] : memref<9x512xf32, #tpu.memory_space<vmem>>, vector<1x512xf32>
    %361 = vector.broadcast %360 : vector<1x512xf32> to vector<8x512xf32>
    %362 = arith.mulf %359, %361 : vector<8x512xf32>
    %c1_i32_161 = arith.constant 1 : i32
    %363 = tpu.dynamic_rotate %347 by %c1_i32_161 dim 1 : vector<8x512xf32>, i32 -> vector<8x512xf32>
    %c3_162 = arith.constant 3 : index
    %c0_163 = arith.constant 0 : index
    %364 = vector.load %arg9[%c3_162, %c0_163] : memref<9x512xf32, #tpu.memory_space<vmem>>, vector<1x512xf32>
    %365 = vector.broadcast %364 : vector<1x512xf32> to vector<8x512xf32>
    %366 = arith.mulf %363, %365 : vector<8x512xf32>
    %367 = tpu.concatenate %362, %366 in 0 : vector<8x512xf32>, vector<8x512xf32> -> vector<16x512xf32>
    %368 = arith.truncf %367 : vector<16x512xf32> to vector<16x512xbf16>
    %c511_i32_164 = arith.constant 511 : i32
    %369 = tpu.dynamic_rotate %347 by %c511_i32_164 dim 1 : vector<8x512xf32>, i32 -> vector<8x512xf32>
    %c5_165 = arith.constant 5 : index
    %c0_166 = arith.constant 0 : index
    %370 = vector.load %arg9[%c5_165, %c0_166] : memref<9x512xf32, #tpu.memory_space<vmem>>, vector<1x512xf32>
    %371 = vector.broadcast %370 : vector<1x512xf32> to vector<8x512xf32>
    %372 = arith.mulf %369, %371 : vector<8x512xf32>
    %373 = tpu.concatenate %347, %372 in 0 : vector<8x512xf32>, vector<8x512xf32> -> vector<16x512xf32>
    %374 = arith.truncf %373 : vector<16x512xf32> to vector<16x512xbf16>
    %c497_i32_167 = arith.constant 497 : i32
    %375 = tpu.dynamic_rotate %347 by %c497_i32_167 dim 1 : vector<8x512xf32>, i32 -> vector<8x512xf32>
    %c6_168 = arith.constant 6 : index
    %c0_169 = arith.constant 0 : index
    %376 = vector.load %arg9[%c6_168, %c0_169] : memref<9x512xf32, #tpu.memory_space<vmem>>, vector<1x512xf32>
    %377 = vector.broadcast %376 : vector<1x512xf32> to vector<8x512xf32>
    %378 = arith.mulf %375, %377 : vector<8x512xf32>
    %c496_i32_170 = arith.constant 496 : i32
    %379 = tpu.dynamic_rotate %347 by %c496_i32_170 dim 1 : vector<8x512xf32>, i32 -> vector<8x512xf32>
    %c7_171 = arith.constant 7 : index
    %c0_172 = arith.constant 0 : index
    %380 = vector.load %arg9[%c7_171, %c0_172] : memref<9x512xf32, #tpu.memory_space<vmem>>, vector<1x512xf32>
    %381 = vector.broadcast %380 : vector<1x512xf32> to vector<8x512xf32>
    %382 = arith.mulf %379, %381 : vector<8x512xf32>
    %383 = tpu.concatenate %378, %382 in 0 : vector<8x512xf32>, vector<8x512xf32> -> vector<16x512xf32>
    %384 = arith.truncf %383 : vector<16x512xf32> to vector<16x512xbf16>
    %c495_i32_173 = arith.constant 495 : i32
    %385 = tpu.dynamic_rotate %347 by %c495_i32_173 dim 1 : vector<8x512xf32>, i32 -> vector<8x512xf32>
    %c8_174 = arith.constant 8 : index
    %c0_175 = arith.constant 0 : index
    %386 = vector.load %arg9[%c8_174, %c0_175] : memref<9x512xf32, #tpu.memory_space<vmem>>, vector<1x512xf32>
    %387 = vector.broadcast %386 : vector<1x512xf32> to vector<8x512xf32>
    %388 = arith.mulf %385, %387 : vector<8x512xf32>
    %389 = arith.truncf %388 : vector<8x512xf32> to vector<8x512xbf16>
    %390 = tpu.concatenate %358, %368, %374, %384, %389 in 0 : vector<16x512xbf16>, vector<16x512xbf16>, vector<16x512xbf16>, vector<16x512xbf16>, vector<8x512xbf16> -> vector<72x512xbf16>
    %cst_176 = arith.constant dense<0.000000e+00> : vector<3x512xf32>
    %391 = tpu.matmul %348, %390, %cst_176 {dimension_numbers = #tpu.dot_dimension_numbers<[1], [0], [0], [1], [0, 0, 1, 1], [], []>} : vector<3x72xbf16>, vector<72x512xbf16>, vector<3x512xf32> -> vector<3x512xf32>
    %392 = math.tanh %391 : vector<3x512xf32>
    %c0_177 = arith.constant 0 : index
    %c0_178 = arith.constant 0 : index
    %393 = vector.load %arg11[%c0_177, %c0_178] : memref<3x512xf32, #tpu.memory_space<vmem>>, vector<3x512xf32>
    tpu.vector_store %arg11[%c0_177, %c0_178], %392 {strides = array<i32>} : memref<3x512xf32, #tpu.memory_space<vmem>>, vector<3x512xf32>,
    return
  }
}

</mosaic_0001>

<bundles_post_ra>
// kernel: resnet_g_forward.1
= control target key start
LH: loop header
LB: loop body
LE: loop exit
PB: predicated region body
PF: predicated region fallthrough
CT: control target
= control target key end

     0   :  { %16 = vsyncpa [#allocation3], 0  ;;  %s3036_s0 = inlined_call_operand.vmem [shape: f32[8,32], index: 0, kind: input, shape index: {}]   ;;  %s3037_s1 = inlined_call_operand.vmem [shape: f32[8,8,32], index: 1, kind: input, shape index: {}]   ;;  %s3038_s2 = inlined_call_operand.hbm [shape: bf16[32,128], index: 2, kind: input, shape index: {}]   ;;  %s3039_s3 = inlined_call_operand.vmem [shape: bf16[8,72], index: 3, kind: input, shape index: {}]   ;;  %s3040_s4 = inlined_call_operand.vmem [shape: bf16[8,72], index: 4, kind: input, shape index: {}]   ;;  %s3041_s5 = inlined_call_operand.hbm [shape: f32[9,128], index: 5, kind: input, shape index: {}]   ;;  %s3042_s6 = inlined_call_operand.hbm [shape: bf16[128,512], index: 6, kind: input, shape index: {}]   ;;  %s3043_s7 = inlined_call_operand.vmem [shape: bf16[8,72], index: 7, kind: input, shape index: {}]   ;;  %s3044_s8 = inlined_call_operand.hbm [shape: bf16[8,72], index: 8, kind: input, shape index: {}]   ;;  %s3045_s9 = inlined_call_operand.hbm [shape: f32[9,512], index: 9, kind: input, shape index: {}]   ;;  %s3046_s10 = inlined_call_operand.vmem [shape: bf16[3,72], index: 10, kind: input, shape index: {}]   ;;  %s3047_s11 = inlined_call_operand.vmem [shape: f32[3,512], index: 11, kind: output, shape index: {}]  }
   0x1   :  { %17 = vsyncpa [#allocation5], 0 }
   0x2   :  { %18 = vsyncpa [#allocation8], 0  ;;  %s2085_s17 = smov [#allocation4]  }
   0x3   :  { %s44_s18 = sshll.u32 %s2085_s17, 4  ;;  %s45_s18 = int_to_ptr.vmem [resolvable:$true] %s44_s18 }
   0x4   :  { %s1987_s19 = scalar_lea.vmem %s45_s18, 256  ;;  %p1992_p1 = scmp.lt.s32.totalorder %s45_s18, %s45_s18 }
   0x5   :  { %p1988_p0 = scmp.ne.s32.totalorder %s45_s18, %s1987_s19  ;;  %p1993_p2 = scmp.lt.s32.totalorder %s1987_s19, %s1987_s19 }
   0x7   :  { %p1994_p3 = por %p1993_p2, %p1992_p1 }
   0x9   :  { %p1995_p4 = pnand %p1994_p3, %p1988_p0 }
   0xb   :  { %1998 = shalt.err (!%p1995_p4)
}
   0xc   :  { %s2086_s20 = smov 128   ;;  %s2087_s21 = smov 8  }
   0xd   :  { %50 = dma.hbm_to_vmem [thread:$0]  %s3041_s5, 256, %s45_s18, [#allocation5], %s2086_s20, %s2086_s20, %s2087_s21  }
   0xe   :  { %s2088_s24 = smov [#allocation7]   ;;  %s2089_s26 = smov [#allocation2]  }
   0xf   :  { %s71_s25 = sshll.u32 %s2088_s24, 4  ;;  %s28_s27 = sshll.u32 %s2089_s26, 4  ;;  %s72_s25 = int_to_ptr.vmem [resolvable:$true] %s71_s25  ;;  %s29_s27 = int_to_ptr.vmem [resolvable:$true] %s28_s27 }
  0x10   :  { %s2007_s28 = scalar_lea.vmem %s72_s25, 64  ;;  %p2012_p6 = scmp.lt.s32.totalorder %s72_s25, %s72_s25 }
  0x11   :  { %p2008_p5 = scmp.ne.s32.totalorder %s72_s25, %s2007_s28  ;;  %p2013_p7 = scmp.lt.s32.totalorder %s2007_s28, %s2007_s28 }
  0x13   :  { %p2014_p8 = por %p2013_p7, %p2012_p6 }
  0x15   :  { %p2015_p9 = pnand %p2014_p8, %p2008_p5 }
  0x17   :  { %2018 = shalt.err (!%p2015_p9)
}
  0x18   :  { %74 = dma.hbm_to_vmem [thread:$0]  %s3044_s8, 64, %s72_s25, [#allocation8]  }
  0x19   :  { %s2027_s12 = scalar_lea.vmem %s29_s27, 256  ;;  %p2032_p11 = scmp.lt.s32.totalorder %s29_s27, %s29_s27 }
  0x1a   :  { %p2028_p10 = scmp.ne.s32.totalorder %s29_s27, %s2027_s12  ;;  %p2033_p12 = scmp.lt.s32.totalorder %s2027_s12, %s2027_s12 }
  0x1c   :  { %p2034_p13 = por %p2033_p12, %p2032_p11 }
  0x1e   :  { %p2035_p0 = pnand %p2034_p13, %p2028_p10 }
  0x20   :  { %2038 = shalt.err (!%p2035_p0)
}
  0x21   :  { %s2090_s5 = smov 64   ;;  %s2091_s13 = smov 4  }
  0x22   :  { %34 = dma.hbm_to_vmem [thread:$0]  %s3038_s2, 256, %s29_s27, [#allocation3], %s2090_s5, %s2090_s5, %s2091_s13  }
  0x23   :  { %s2092_s16 = smov [#allocation6]  }
  0x24   :  { %s56_s17 = sshll.u32 %s2092_s16, 4  ;;  %s57_s17 = int_to_ptr.vmem [resolvable:$true] %s56_s17 }
  0x25   :  { %s2047_s18 = scalar_lea.vmem %s57_s17, 4096  ;;  %p2052_p2 = scmp.lt.s32.totalorder %s57_s17, %s57_s17 }
  0x26   :  { %p2048_p1 = scmp.ne.s32.totalorder %s57_s17, %s2047_s18  ;;  %p2053_p3 = scmp.lt.s32.totalorder %s2047_s18, %s2047_s18 }
  0x28   :  { %p2054_p4 = por %p2053_p3, %p2052_p2 }
  0x2a   :  { %p2055_p5 = pnand %p2054_p4, %p2048_p1 }
  0x2c   :  { %2058 = shalt.err (!%p2055_p5)
}
  0x2d   :  { %s2093_s8 = smov 256   ;;  %s2094_s19 = smov 16  }
  0x2e   :  { %62 = dma.hbm_to_vmem [thread:$0]  %s3042_s6, 4096, %s57_s17, [#allocation5], %s2093_s8, %s2093_s8, %s2094_s19  }
  0x2f   :  { %s2095_s23 = smov [#allocation9]  }
  0x30   :  { %s80_s24 = sshll.u32 %s2095_s23, 4  ;;  %s81_s24 = int_to_ptr.vmem [resolvable:$true] %s80_s24 }
  0x31   :  { %s2067_s2 = scalar_lea.vmem %s81_s24, 1024  ;;  %p2072_p7 = scmp.lt.s32.totalorder %s81_s24, %s81_s24 }
  0x32   :  { %p2068_p6 = scmp.ne.s32.totalorder %s81_s24, %s2067_s2  ;;  %p2073_p8 = scmp.lt.s32.totalorder %s2067_s2, %s2067_s2 }
  0x34   :  { %p2074_p9 = por %p2073_p8, %p2072_p7 }
  0x36   :  { %p2075_p10 = pnand %p2074_p9, %p2068_p6 }
  0x38   :  { %2078 = shalt.err (!%p2075_p10)
}
  0x39   :  { %s2096_s25 = smov 512   ;;  %s2097_s26 = smov 32  }
  0x3a   :  { %86 = dma.hbm_to_vmem [thread:$0]  %s3045_s9, 1024, %s81_s24, [#allocation8], %s2096_s25, %s2096_s25, %s2097_s26  }
  0x3b   :  { %2079 = dma.done.wait [#allocation3], 256  }
  0x3c   :  { %2080 = vsyncadd [#allocation3], 4294967040 }
  0x3d   :  { %2081 = dma.done.wait [#allocation5], 4352  }
  0x3e   :  { %2082 = vsyncadd [#allocation5], 4294962944 }
  0x3f   :  { %2083 = dma.done.wait [#allocation8], 1088  }
  0x40   :  { %2084 = vsyncadd [#allocation8], 4294966208  ;;  %v107_v0 = vlaneseq  ;;  %v105_v7 = vld [vmem:[%s3036_s0] sm:$0xff]  ;;  %v1768_v9 = vld [vmem:[%s3037_s1 + $0x8] sm:$0xff]  ;;  %vm168_vm0 = vcmask 261120   ;;  %v2098_v46 = vmov 0.0  }
  0x41   :  { %v106_v8 = vld [vmem:[%s3037_s1] sm:$0xff]  ;;  %v1769_v13 = vld [vmem:[%s3037_s1 + $0x10] sm:$0xff]  ;;  %v1770_v16 = vld [vmem:[%s3037_s1 + $0x18] sm:$0xff]  ;;  %1847 = vmatprep.subr.bf16.mxu0 %v2098_v46  ;;  %vm2099_vm1 = vmmov 0   ;;  %1855 = vmatprep.subr.bf16.mxu1 %v2098_v46  ;;  %s2101_s2 = smov 119   ;;  %s2102_s25 = smov 121  }
  0x42   :  { %v108_v1 = vshrl.u32 %v107_v0, 7  ;;  %v1771_v17 = vld [vmem:[%s3037_s1 + $0x20] sm:$0xff]  ;;  %v1772_v23 = vld [vmem:[%s3037_s1 + $0x28] sm:$0xff]  ;;  %v1773_v28 = vld [vmem:[%s3037_s1 + $0x30] sm:$0xff]  ;;  %1851 = vmatprep.mubr.msk.bf16.mxu0 %vm2099_vm1, %v2098_v46  ;;  %1865 = vmatprep.mubr.msk.bf16.mxu1 %vm2099_vm1, %v2098_v46  ;;  %s2103_s26 = smov 127   ;;  %s2104_s27 = smov 7  }
  0x43   :  { %v1774_v32 = vld [vmem:[%s3037_s1 + $0x38] sm:$0xff]  ;;  %v1911_v45 = vld [vmem:[#allocation2 + $0x8] sm:$0xff]   ;;  %v1912_v47 = vld [vmem:[#allocation2] sm:$0xff]   ;;  %s2100_s1 = smov 120   ;;  %s2105_s28 = smov 1   ;;  %vm321_vm2 = vcmask 1043456  }
  0x44   :  { %v2191_v2 = vsub.s32 0, %v108_v1  ;;  %v2193_v3 = vsub.s32 1, %v108_v1  ;;  %v2195_v4 = vsub.s32 2, %v108_v1  ;;  %v2197_v5 = vsub.s32 3, %v108_v1  ;;  %1848 = vmatpush3.bf16.msra.mxu0 %v1911_v45  ;;  %s2106_s6 = smov 9   ;;  %s2109_s30 = smov 112  }
  0x45   :  { %v140_v6 = vsub.s32 4, %v108_v1  ;;  %v148_v10 = vsub.s32 5, %v108_v1  ;;  %v156_v18 = vsub.s32 6, %v108_v1  ;;  %v164_v27 = vsub.s32 7, %v108_v1  ;;  %1849 = vmatprep.subr.bf16.mxu0 %v2098_v46  ;;  %s2110_s12 = smov 113   ;;  %s2111_s5 = smov 15  }
  0x46   :  { %v110_v11 = vrot.slane %v105_v7, %v2191_v2  ;;  %v117_v12 = vrot.slane %v105_v7, %v2193_v3  ;;  %v125_v14 = vrot.slane %v105_v7, %v2195_v4  ;;  %v133_v15 = vrot.slane %v105_v7, %v2197_v5  ;;  %s2112_s13 = smov 17  }
  0x47   :  { %v141_v22 = vrot.slane %v105_v7, %v140_v6  ;;  %v149_v26 = vrot.slane %v105_v7, %v148_v10  ;;  %v157_v31 = vrot.slane %v105_v7, %v156_v18  ;;  %v165_v35 = vrot.slane %v105_v7, %v164_v27  ;;  %v2253_v6 = vld [vmem:[#allocation4 + $0x8] ss:$0 sm:$0xff] }
  0x48   :  { %v111_v19 = vmul.f32 %v110_v11, %v106_v8  ;;  %v118_v20 = vmul.f32 %v1768_v9, %v117_v12  ;;  %v126_v21 = vmul.f32 %v1769_v13, %v125_v14  ;;  %v134_v25 = vmul.f32 %v1770_v16, %v133_v15  ;;  %1850 = vmatpush3.bf16.msra.mxu0 %v1912_v47  ;;  %v2256_v9 = vld [vmem:[#allocation4 + $0x7] ss:$0 sm:$0xff]  ;;  %v2258_v11 = vld [vmem:[#allocation4 + $0x6] ss:$0 sm:$0xff] }
  0x49   :  { %v142_v30 = vmul.f32 %v1771_v17, %v141_v22  ;;  %v150_v34 = vmul.f32 %v1772_v23, %v149_v26  ;;  %v158_v37 = vmul.f32 %v1773_v28, %v157_v31  ;;  %v166_v39 = vmul.f32 %v1774_v32, %v165_v35  ;;  %1869 = vmatprep.subr.bf16.mxu0 %v2098_v46  ;;  %v2263_v17 = vld [vmem:[#allocation4 + $0x5] ss:$0 sm:$0xff]  ;;  %v2268_v23 = vld [vmem:[#allocation4 + $0x2] ss:$0 sm:$0xff]  ;;  %v2277_v31 = vld [vmem:[#allocation4 + $0x1] ss:$0 sm:$0xff] }
  0x4a   :  { %v119_v24 = vadd.f32 %v118_v20, %v111_v19  ;;  %vm317_vm3 = vcmask 588800  }
  0x4c   :  { %v127_v29 = vadd.f32 %v126_v21, %v119_v24  ;;  %v2270_v24 = vld [vmem:[#allocation4 + $0x3] ss:$0 sm:$0xff] }
  0x4e   :  { %v135_v33 = vadd.f32 %v134_v25, %v127_v29 }
  0x50   :  { %v143_v36 = vadd.f32 %v142_v30, %v135_v33  ;;  %v2275_v30 = vld [vmem:[#allocation4] ss:$0 sm:$0xff] }
  0x52   :  { %v151_v38 = vadd.f32 %v150_v34, %v143_v36  ;;  %v247_v36 = vld [vmem:[%s3039_s3] sm:$0xf] }
  0x54   :  { %v159_v40 = vadd.f32 %v158_v37, %v151_v38 }
  0x56   :  { %v167_v41 = vadd.f32 %v166_v39, %v159_v40 }
  0x58   :  { %v169_v42 = vsel %vm168_vm0, %v167_v41, 0.0  ;;  %v173_v43 = vmul.f32 %v167_v41, %v167_v41 }
  0x59   :  { %170 = vadd.xlane.f32.xlu0 %v169_v42 }
  0x5a   :  { %v174_v44 = vsel %vm168_vm0, %v173_v43, 0.0 }
  0x5d   :  { %175 = vadd.xlane.f32.xlu0 %v174_v44 }
  0xe2   :  { %v171_v48 = vpop.xlane.xlu0 %170 }
  0xe3   :  { %v172_v49 = vmul.f32 0.03125, %v171_v48 }
  0xe5   :  { %v178_v51 = vmul.f32 %v172_v49, %v172_v49  ;;  %v183_v56 = vsub.f32 %v167_v41, %v172_v49 }
  0xe6   :  { %v176_v50 = vpop.xlane.xlu0 %175 }
  0xe7   :  { %v177_v52 = vmul.f32 0.03125, %v176_v50  ;;  %v184_v57 = vmax.f32 %v183_v56, 0.0 }
  0xe9   :  { %v179_v53 = vsub.f32 %v177_v52, %v178_v51 }
  0xeb   :  { %v180_v54 = vmax.f32 %v179_v53, 0.0 }
  0xed   :  { %v181_v55 = vadd.f32 1e-05, %v180_v54 }
  0xef   :  { %1961 = vrsqrt.f32 %v181_v55 }
  0xfc   :  { %v1962_v58 = vpop.eup %1961 }
  0xfd   :  { %v185_v59 = vmul.f32 %v1962_v58, %v184_v57 }
  0xff   :  { %v186_v60 = vpack.c.bf16 %v185_v59, %v167_v41 }
 0x101   :  { %1852 = vmatmul.mubr.msk.bf16.vlgmr.msra.gmra.mxu0 %vm168_vm0, %v186_v60 }
 0x102   :  { %1879 = vmatprep.mubr.msk.bf16.mxu0 %vm2099_vm1, %v2098_v46 }
 0x1c1   :  { %v2243_v61 = vpop.f32.mrf.mxu0 }
 0x1c3   :  { %v1853_v62 = vpop.f32.mrf.mxu0 }
 0x1c5   :  { %v243_v63 = vpop.f32.mrf.mxu0 }
 0x1c6   :  { %299 = vrot.lane.b32.xlu0 %v243_v63, %s2100_s1  ;;  %308 = vrot.lane.b32.xlu1 %v243_v63, %s2101_s2 }
 0x1c7   :  { %v1854_v1 = vpop.f32.mrf.mxu0 }
 0x1ca   :  { %291 = vrot.lane.b32.xlu1 %v243_v63, %s2102_s25 }
 0x1ce   :  { %282 = vrot.lane.b32.xlu1 %v243_v63, %s2103_s26 }
 0x1d2   :  { %265 = vrot.lane.b32.xlu1 %v243_v63, %s2104_s27 }
 0x1d6   :  { %273 = vrot.lane.b32.xlu1 %v243_v63, %s2105_s28 }
 0x1da   :  { %248 = vrot.lane.b32.xlu1 %v243_v63, %s2106_s6 }
 0x1de   :  { %256 = vrot.lane.b32.xlu1 %v243_v63, %s2087_s21 }
 0x238   :  { %v309_v7 = vpop.permute.xlu1 %308  ;;  %v300_v10 = vpop.permute.xlu0 %299 }
 0x239   :  { %v315_v8 = vmul.f32 %v2253_v6, %v309_v7  ;;  %v306_v14 = vmul.f32 %v2256_v9, %v300_v10 }
 0x23b   :  { %v316_v12 = vpack.c.bf16 %v315_v8, %v315_v8 }
 0x23c   :  { %v292_v13 = vpop.permute.xlu1 %291 }
 0x23d   :  { %v298_v15 = vmul.f32 %v2258_v11, %v292_v13  ;;  %v323_v16 = vsel %vm321_vm2, %v316_v12, 0 }
 0x23e   :  { %1856 = vmatpush3.bf16.msra.mxu1 %v323_v16 }
 0x23f   :  { %v307_v18 = vpack.c.bf16 %v306_v14, %v298_v15  ;;  %1857 = vmatprep.subr.bf16.mxu1 %v2098_v46 }
 0x240   :  { %v283_v19 = vpop.permute.xlu1 %282 }
 0x241   :  { %v289_v20 = vmul.f32 %v2263_v17, %v283_v19  ;;  %v380_v19 = vld [vmem:[%s3040_s4] sm:$0xf]  ;;  %s2108_s4 = smov 111  }
 0x242   :  { %1858 = vmatpush3.bf16.msra.mxu1 %v307_v18 }
 0x243   :  { %v290_v21 = vpack.c.bf16 %v289_v20, %v243_v63  ;;  %1859 = vmatprep.subr.bf16.mxu1 %v2098_v46  ;;  %v1913_v20 = vld [vmem:[#allocation6 + $0xe0] ss:$16 sps:$4 sm:$0xff]  }
 0x244   :  { %v266_v22 = vpop.permute.xlu1 %265 }
 0x245   :  { %v272_v26 = vmul.f32 %v2268_v23, %v266_v22  ;;  %v1916_v22 = vld [vmem:[#allocation6 + $0xe8] ss:$16 sps:$4 sm:$0xff]  }
 0x246   :  { %1860 = vmatpush3.bf16.msra.mxu1 %v290_v21  ;;  %v1915_v21 = vld [vmem:[#allocation6 + $0xe4] ss:$16 sps:$4 sm:$0xff]  }
 0x247   :  { %1861 = vmatprep.subr.bf16.mxu1 %v2098_v46 }
 0x248   :  { %v274_v25 = vpop.permute.xlu1 %273 }
 0x249   :  { %v280_v27 = vmul.f32 %v2270_v24, %v274_v25 }
 0x24b   :  { %v281_v28 = vpack.c.bf16 %v280_v27, %v272_v26 }
 0x24c   :  { %v249_v29 = vpop.permute.xlu1 %248 }
 0x24d   :  { %1862 = vmatpush3.bf16.msra.mxu1 %v281_v28  ;;  %v255_v33 = vmul.f32 %v2275_v30, %v249_v29  ;;  %v1921_v29 = vld [vmem:[#allocation6 + $0xc4] ss:$16 sps:$4 sm:$0xff]  }
 0x24e   :  { %1863 = vmatprep.subr.bf16.mxu1 %v2098_v46 }
 0x250   :  { %v257_v32 = vpop.permute.xlu1 %256 }
 0x251   :  { %v263_v34 = vmul.f32 %v2277_v31, %v257_v32  ;;  %v1922_v32 = vld [vmem:[#allocation6 + $0xc8] ss:$16 sps:$4 sm:$0xff]  }
 0x253   :  { %v264_v35 = vpack.c.bf16 %v263_v34, %v255_v33  ;;  %v1927_v33 = vld [vmem:[#allocation6 + $0xa4] ss:$16 sps:$4 sm:$0xff]   ;;  %v1925_v34 = vld [vmem:[#allocation6 + $0xa0] ss:$16 sps:$4 sm:$0xff]  }
 0x255   :  { %1864 = vmatpush3.bf16.msra.mxu1 %v264_v35  ;;  %v1928_v35 = vld [vmem:[#allocation6 + $0xa8] ss:$16 sps:$4 sm:$0xff]  }
 0x256   :  { %664 = vmatprep.subr.bf16.mxu1 %v1915_v21 }
 0x258   :  { %1866 = vmatmul.mubr.msk.bf16.vlgmr.msra.gmra.mxu1 %vm317_vm3, %v247_v36  ;;  %v1933_v36 = vld [vmem:[#allocation6 + $0x84] ss:$16 sps:$4 sm:$0xff]  }
 0x259   :  { %665 = vmatpush1.bf16.msra.mxu1 %v1913_v20 }
 0x25a   :  { %666 = vmatprep.subr.bf16.mxu1 %v1921_v29 }
 0x318   :  { %v359_v37 = vpop.f32.mrf.mxu1 }
 0x319   :  { %365 = vadd.xlane.f32.xlu1 %v359_v37  ;;  %v368_v38 = vmul.f32 %v359_v37, %v359_v37 }
 0x31a   :  { %v1867_v39 = vpop.f32.mrf.mxu1 }
 0x31b   :  { %369 = vadd.xlane.f32.xlu0 %v368_v38  ;;  %v1931_v38 = vld [vmem:[#allocation6 + $0x80] ss:$16 sps:$4 sm:$0xff]   ;;  %v1934_v39 = vld [vmem:[#allocation6 + $0x88] ss:$16 sps:$4 sm:$0xff]  }
 0x31c   :  { %v362_v40 = vpop.f32.mrf.mxu1 }
 0x31d   :  { %v1937_v40 = vld [vmem:[#allocation6 + $0x60] ss:$16 sps:$4 sm:$0xff]  }
 0x31e   :  { %v1868_v41 = vpop.f32.mrf.mxu1 }
 0x31f   :  { %v1939_v41 = vld [vmem:[#allocation6 + $0x64] ss:$16 sps:$4 sm:$0xff]  }
 0x3a2   :  { %v366_v42 = vpop.xlane.xlu1 %365 }
 0x3a3   :  { %v367_v43 = vmul.f32 0.0078125, %v366_v42  ;;  %v1940_v42 = vld [vmem:[#allocation6 + $0x68] ss:$16 sps:$4 sm:$0xff]  }
 0x3a4   :  { %v370_v44 = vpop.xlane.xlu0 %369 }
 0x3a5   :  { %v372_v45 = vmul.f32 %v367_v43, %v367_v43  ;;  %v371_v47 = vmul.f32 0.0078125, %v370_v44  ;;  %v377_v51 = vsub.f32 %v359_v37, %v367_v43  ;;  %v1936_v37 = vld [vmem:[#allocation6 + $0x8c] ss:$16 sps:$4 sm:$0xff]   ;;  %v1945_v44 = vld [vmem:[#allocation6 + $0x44] ss:$16 sps:$4 sm:$0xff]  }
 0x3a6   :  { %v1942_v43 = vld [vmem:[#allocation6 + $0x6c] ss:$16 sps:$4 sm:$0xff]  }
 0x3a7   :  { %v373_v48 = vsub.f32 %v371_v47, %v372_v45  ;;  %v378_v52 = vmax.f32 %v377_v51, 0.0  ;;  %v1948_v45 = vld [vmem:[#allocation6 + $0x4c] ss:$16 sps:$4 sm:$0xff]   ;;  %v1943_v47 = vld [vmem:[#allocation6 + $0x40] ss:$16 sps:$4 sm:$0xff]   ;;  %v2107_v51 = vmov 0  }
 0x3a8   :  { %696 = vmatprep.mubr.bf16.mxu1 %v2107_v51 }
 0x3a9   :  { %v374_v49 = vmax.f32 %v373_v48, 0.0  ;;  %v1946_v48 = vld [vmem:[#allocation6 + $0x48] ss:$16 sps:$4 sm:$0xff]  }
 0x3ab   :  { %v375_v50 = vadd.f32 1e-05, %v374_v49  ;;  %v1951_v49 = vld [vmem:[#allocation6 + $0x24] ss:$16 sps:$4 sm:$0xff]  }
 0x3ad   :  { %1963 = vrsqrt.f32 %v375_v50  ;;  %v1954_v50 = vld [vmem:[#allocation6 + $0x2c] ss:$16 sps:$4 sm:$0xff]  }
 0x3ba   :  { %v1964_v53 = vpop.eup %1963 }
 0x3bb   :  { %v379_v54 = vmul.f32 %v1964_v53, %v378_v52  ;;  %v1949_v52 = vld [vmem:[#allocation6 + $0x20] ss:$16 sps:$4 sm:$0xff]   ;;  %v1952_v53 = vld [vmem:[#allocation6 + $0x28] ss:$16 sps:$4 sm:$0xff]  }
 0x3bd   :  { %399 = vrot.lane.b32.xlu1 %v379_v54, %s2102_s25  ;;  %406 = vrot.lane.b32.xlu0 %v379_v54, %s2101_s2 }
 0x3c1   :  { %402 = vrot.lane.b32.xlu1 %v379_v54, %s2100_s1  ;;  %395 = vrot.lane.b32.xlu0 %v379_v54, %s2103_s26 }
 0x3c5   :  { %388 = vrot.lane.b32.xlu1 %v379_v54, %s2104_s27  ;;  %391 = vrot.lane.b32.xlu0 %v379_v54, %s2105_s28 }
 0x3c9   :  { %381 = vrot.lane.b32.xlu1 %v379_v54, %s2106_s6  ;;  %384 = vrot.lane.b32.xlu0 %v379_v54, %s2087_s21 }
 0x42f   :  { %v400_v55 = vpop.permute.xlu1 %399  ;;  %v407_v56 = vpop.permute.xlu0 %406 }
 0x430   :  { %v408_v57 = vmul.f32 %v2253_v6, %v407_v56  ;;  %v401_v62 = vmul.f32 %v2258_v11, %v400_v55  ;;  %v1960_v55 = vld [vmem:[#allocation6 + $0xc] ss:$16 sps:$4 sm:$0xff]   ;;  %v1955_v56 = vld [vmem:[#allocation6] ss:$16 sps:$4 sm:$0xff]  }
 0x432   :  { %v409_v58 = vpack.c.bf16 %v408_v57, %v408_v57  ;;  %v1958_v57 = vld [vmem:[#allocation6 + $0x8] ss:$16 sps:$4 sm:$0xff]  }
 0x433   :  { %v403_v59 = vpop.permute.xlu1 %402  ;;  %v396_v60 = vpop.permute.xlu0 %395 }
 0x434   :  { %v404_v63 = vmul.f32 %v2256_v9, %v403_v59  ;;  %v414_v1 = vsel %vm321_vm2, %v409_v58, 0  ;;  %v397_v8 = vmul.f32 %v2263_v17, %v396_v60 }
 0x435   :  { %1870 = vmatpush3.bf16.msra.mxu0 %v414_v1 }
 0x436   :  { %v405_v7 = vpack.c.bf16 %v404_v63, %v401_v62  ;;  %1871 = vmatprep.subr.bf16.mxu0 %v2098_v46  ;;  %v398_v6 = vpack.c.bf16 %v397_v8, %v379_v54  ;;  %v1957_v54 = vld [vmem:[#allocation6 + $0x4] ss:$16 sps:$4 sm:$0xff]  }
 0x437   :  { %v389_v10 = vpop.permute.xlu1 %388  ;;  %v392_v12 = vpop.permute.xlu0 %391 }
 0x438   :  { %v390_v13 = vmul.f32 %v2268_v23, %v389_v10  ;;  %v393_v11 = vmul.f32 %v2270_v24, %v392_v12  ;;  %v1918_v23 = vld [vmem:[#allocation6 + $0xec] ss:$16 sps:$4 sm:$0xff]  }
 0x439   :  { %1872 = vmatpush3.bf16.msra.mxu0 %v405_v7 }
 0x43a   :  { %1873 = vmatprep.subr.bf16.mxu0 %v2098_v46  ;;  %v394_v15 = vpack.c.bf16 %v393_v11, %v390_v13 }
 0x43b   :  { %v382_v14 = vpop.permute.xlu1 %381  ;;  %v385_v9 = vpop.permute.xlu0 %384 }
 0x43c   :  { %v383_v16 = vmul.f32 %v2275_v30, %v382_v14  ;;  %v386_v17 = vmul.f32 %v2277_v31, %v385_v9  ;;  %v1924_v30 = vld [vmem:[#allocation6 + $0xcc] ss:$16 sps:$4 sm:$0xff]   ;;  %v1919_v31 = vld [vmem:[#allocation6 + $0xc0] ss:$16 sps:$4 sm:$0xff]  }
 0x43d   :  { %1874 = vmatpush3.bf16.msra.mxu0 %v398_v6  ;;  %667 = vmatpush1.bf16.msra.mxu1 %v1919_v31 }
 0x43e   :  { %1875 = vmatprep.subr.bf16.mxu0 %v2098_v46  ;;  %v387_v18 = vpack.c.bf16 %v386_v17, %v383_v16  ;;  %668 = vmatprep.subr.bf16.mxu1 %v1927_v33 }
 0x441   :  { %1876 = vmatpush3.bf16.msra.mxu0 %v394_v15  ;;  %669 = vmatpush1.bf16.msra.mxu1 %v1925_v34  ;;  %v978_v34 = vld [vmem:[#allocation9 + $0x6] ss:$8 sm:$0xf] }
 0x442   :  { %1877 = vmatprep.subr.bf16.mxu0 %v2098_v46  ;;  %670 = vmatprep.subr.bf16.mxu1 %v1933_v36  ;;  %v1062_v36 = vld [vmem:[#allocation9 + $0x20] ss:$8 sm:$0xf] }
 0x445   :  { %1878 = vmatpush3.bf16.msra.mxu0 %v387_v18  ;;  %671 = vmatpush1.bf16.msra.mxu1 %v1931_v38  ;;  %v2431_v38 = vrot.slane %v978_v34, %v2193_v3 }
 0x446   :  { %707 = vmatprep.subr.bf16.mxu0 %v1918_v23  ;;  %672 = vmatprep.subr.bf16.mxu1 %v1939_v41 }
 0x448   :  { %1880 = vmatmul.mubr.msk.bf16.vlgmr.msra.gmra.mxu0 %vm317_vm3, %v380_v19 }
 0x449   :  { %708 = vmatpush1.bf16.msra.mxu0 %v1916_v22  ;;  %673 = vmatpush1.bf16.msra.mxu1 %v1937_v40 }
 0x44a   :  { %709 = vmatprep.subr.bf16.mxu0 %v1924_v30  ;;  %674 = vmatprep.subr.bf16.mxu1 %v1945_v44  ;;  %v2447_v44 = vrot.slane %v1062_v36, %v2193_v3 }
 0x44b   :  { %739 = vmatprep.mubr.bf16.mxu0 %v2107_v51 }
 0x44d   :  { %710 = vmatpush1.bf16.msra.mxu0 %v1922_v32  ;;  %675 = vmatpush1.bf16.msra.mxu1 %v1943_v47  ;;  %v2422_v32 = vand.u32 127, %v107_v0  ;;  %v934_v0 = vld [vmem:[#allocation9 + $0x5] ss:$8 sm:$0xf]  ;;  %v2453_v47 = vrot.slane %v1062_v36, %v2197_v5 }
 0x44e   :  { %676 = vmatprep.subr.bf16.mxu1 %v1951_v49  ;;  %v2460_v49 = vrot.slane %v934_v0, %v2193_v3 }
 0x44f   :  { %vm972_vm4 = vcmp.lt.s32.totalorder %v2422_v32, 113  ;;  %vm1012_vm5 = vcmp.lt.s32.totalorder %v2422_v32, 112  ;;  %vm1056_vm6 = vcmp.lt.s32.totalorder %v2422_v32, 111  ;;  %vm928_vm7 = vcmp.lt.s32.totalorder %v2422_v32, 127 }
 0x450   :  { %vm844_vm8 = vcmp.lt.s32.totalorder %v2422_v32, 15  ;;  %vm884_vm9 = vcmp.lt.s32.totalorder %v2422_v32, 1  ;;  %vm761_vm10 = vcmp.lt.s32.totalorder %v2422_v32, 17  ;;  %vm800_vm11 = vcmp.lt.s32.totalorder %v2422_v32, 16 }
 0x451   :  { %677 = vmatpush1.bf16.msra.mxu1 %v1949_v52 }
 0x452   :  { %678 = vmatprep.subr.bf16.mxu1 %v1957_v54 }
 0x455   :  { %679 = vmatpush1.bf16.msra.mxu1 %v1955_v56 }
 0x508   :  { %v450_v24 = vpop.f32.mrf.mxu0 }
 0x509   :  { %v2312_v25 = vadd.f32 %v450_v24, %v2243_v61  ;;  %v1930_v61 = vld [vmem:[#allocation6 + $0xac] ss:$16 sps:$4 sm:$0xff]  }
 0x50a   :  { %v1881_v46 = vpop.f32.mrf.mxu0  ;;  %711 = vmatprep.subr.bf16.mxu0 %v1930_v61 }
 0x50b   :  { %456 = vadd.xlane.f32.xlu1 %v2312_v25  ;;  %v459_v26 = vmul.f32 %v2312_v25, %v2312_v25  ;;  %712 = vmatpush1.bf16.msra.mxu0 %v1928_v35  ;;  %v1018_v35 = vld [vmem:[#allocation9 + $0x7] ss:$8 sm:$0xf] }
 0x50c   :  { %v453_v27 = vpop.f32.mrf.mxu0  ;;  %713 = vmatprep.subr.bf16.mxu0 %v1936_v37  ;;  %v2428_v37 = vrot.slane %v978_v34, %v2191_v2  ;;  %v2437_v41 = vrot.slane %v1018_v35, %v2191_v2  ;;  %v2466_v52 = vrot.slane %v1018_v35, %v2197_v5 }
 0x50d   :  { %460 = vadd.xlane.f32.xlu0 %v459_v26 }
 0x50e   :  { %v1882_v28 = vpop.f32.mrf.mxu0 }
 0x50f   :  { %714 = vmatpush1.bf16.msra.mxu0 %v1934_v39 }
 0x510   :  { %715 = vmatprep.subr.bf16.mxu0 %v1942_v43  ;;  %v2444_v43 = vrot.slane %v1062_v36, %v2191_v2 }
 0x513   :  { %716 = vmatpush1.bf16.msra.mxu0 %v1940_v42  ;;  %v2440_v42 = vrot.slane %v1018_v35, %v2193_v3 }
 0x514   :  { %717 = vmatprep.subr.bf16.mxu0 %v1948_v45  ;;  %v2450_v45 = vrot.slane %v1062_v36, %v2195_v4 }
 0x517   :  { %718 = vmatpush1.bf16.msra.mxu0 %v1946_v48  ;;  %v2457_v48 = vrot.slane %v934_v0, %v2191_v2 }
 0x518   :  { %719 = vmatprep.subr.bf16.mxu0 %v1954_v50  ;;  %v2463_v50 = vrot.slane %v1018_v35, %v2195_v4 }
 0x51b   :  { %720 = vmatpush1.bf16.msra.mxu0 %v1952_v53 }
 0x51c   :  { %721 = vmatprep.subr.bf16.mxu0 %v1960_v55 }
 0x51f   :  { %722 = vmatpush1.bf16.msra.mxu0 %v1958_v57 }
 0x594   :  { %v457_v58 = vpop.xlane.xlu1 %456 }
 0x595   :  { %v458_v59 = vmul.f32 0.0078125, %v457_v58  ;;  %v2477_v58 = vrot.slane %v978_v34, %v2195_v4 }
 0x596   :  { %v461_v60 = vpop.xlane.xlu0 %460 }
 0x597   :  { %v463_v62 = vmul.f32 %v458_v59, %v458_v59  ;;  %v462_v63 = vmul.f32 0.0078125, %v461_v60  ;;  %v468_v10 = vsub.f32 %v2312_v25, %v458_v59 }
 0x599   :  { %v464_v1 = vsub.f32 %v462_v63, %v463_v62  ;;  %v469_v12 = vmax.f32 %v468_v10, 0.0 }
 0x59b   :  { %v465_v7 = vmax.f32 %v464_v1, 0.0 }
 0x59d   :  { %v466_v8 = vadd.f32 1e-05, %v465_v7 }
 0x59f   :  { %1965 = vrsqrt.f32 %v466_v8 }
 0x5ac   :  { %v1966_v6 = vpop.eup %1965 }
 0x5ad   :  { %v470_v13 = vmul.f32 %v1966_v6, %v469_v12 }
 0x5af   :  { %v471_v11 = vpack.c.bf16 %v470_v13, %v2312_v25 }
 0x5b1   :  { %697 = vmatmul.mubr.bf16.vlgmr.msra.gmra.mxu1 %v471_v11  ;;  %740 = vmatmul.mubr.bf16.vlgmr.msra.gmra.mxu0 %v471_v11  ;;  %v2497_v11 = vrot.slane %v978_v34, %v2197_v5 }
 0x5b2   :  { %1139 = vmatprep.mubr.bf16.mxu1 %v2107_v51  ;;  %1180 = vmatprep.mubr.bf16.mxu0 %v2107_v51 }
 0x671   :  { %v2323_v14 = vpop.f32.mrf.mxu1  ;;  %v2325_v9 = vpop.f32.mrf.mxu0 }
 0x673   :  { %v2327_v15 = vpop.f32.mrf.mxu1  ;;  %v2329_v16 = vpop.f32.mrf.mxu0 }
 0x675   :  { %v2331_v17 = vpop.f32.mrf.mxu1  ;;  %v2333_v18 = vpop.f32.mrf.mxu0 }
 0x676   :  { %1048 = vrot.lane.b32.xlu0 %v2331_v17, %s2108_s4  ;;  %1052 = vrot.lane.b32.xlu1 %v2333_v18, %s2108_s4 }
 0x677   :  { %v2359_v19 = vpop.f32.mrf.mxu1  ;;  %v2369_v20 = vpop.f32.mrf.mxu0 }
 0x67a   :  { %1004 = vrot.lane.b32.xlu0 %v2331_v17, %s2109_s30  ;;  %968 = vrot.lane.b32.xlu1 %v2333_v18, %s2110_s12 }
 0x67e   :  { %924 = vrot.lane.b32.xlu0 %v2333_v18, %s2103_s26  ;;  %1008 = vrot.lane.b32.xlu1 %v2333_v18, %s2109_s30 }
 0x682   :  { %836 = vrot.lane.b32.xlu0 %v2331_v17, %s2111_s5  ;;  %964 = vrot.lane.b32.xlu1 %v2331_v17, %s2110_s12 }
 0x686   :  { %876 = vrot.lane.b32.xlu0 %v2331_v17, %s2105_s28  ;;  %920 = vrot.lane.b32.xlu1 %v2331_v17, %s2103_s26 }
 0x68a   :  { %880 = vrot.lane.b32.xlu0 %v2333_v18, %s2105_s28  ;;  %751 = vrot.lane.b32.xlu1 %v2331_v17, %s2112_s13 }
 0x68e   :  { %966 = vrot.lane.b32.xlu0 %v2359_v19, %s2110_s12  ;;  %792 = vrot.lane.b32.xlu1 %v2331_v17, %s2094_s19 }
 0x692   :  { %1006 = vrot.lane.b32.xlu0 %v2359_v19, %s2109_s30  ;;  %840 = vrot.lane.b32.xlu1 %v2333_v18, %s2111_s5 }
 0x696   :  { %1050 = vrot.lane.b32.xlu1 %v2359_v19, %s2108_s4  ;;  %1054 = vrot.lane.b32.xlu0 %v2369_v20, %s2108_s4 }
 0x69a   :  { %922 = vrot.lane.b32.xlu1 %v2359_v19, %s2103_s26  ;;  %1010 = vrot.lane.b32.xlu0 %v2369_v20, %s2109_s30 }
 0x69e   :  { %970 = vrot.lane.b32.xlu1 %v2369_v20, %s2110_s12  ;;  %926 = vrot.lane.b32.xlu0 %v2369_v20, %s2103_s26 }
 0x6a2   :  { %838 = vrot.lane.b32.xlu1 %v2359_v19, %s2111_s5  ;;  %882 = vrot.lane.b32.xlu0 %v2369_v20, %s2105_s28 }
 0x6a6   :  { %878 = vrot.lane.b32.xlu1 %v2359_v19, %s2105_s28  ;;  %753 = vrot.lane.b32.xlu0 %v2359_v19, %s2112_s13 }
 0x6aa   :  { %842 = vrot.lane.b32.xlu1 %v2369_v20, %s2111_s5  ;;  %794 = vrot.lane.b32.xlu0 %v2359_v19, %s2094_s19 }
 0x6ae   :  { %757 = vrot.lane.b32.xlu1 %v2369_v20, %s2112_s13  ;;  %798 = vrot.lane.b32.xlu0 %v2369_v20, %s2094_s19 }
 0x6b2   :  { %755 = vrot.lane.b32.xlu1 %v2333_v18, %s2112_s13  ;;  %796 = vrot.lane.b32.xlu0 %v2333_v18, %s2094_s19 }
 0x6e8   :  { %v1049_v21 = vpop.permute.xlu0 %1048  ;;  %v1053_v22 = vpop.permute.xlu1 %1052 }
 0x6ec   :  { %v2403_v23 = vpop.permute.xlu0 %1004  ;;  %v2405_v24 = vpop.permute.xlu1 %968 }
 0x6f0   :  { %v2407_v25 = vpop.permute.xlu0 %924  ;;  %v1009_v46 = vpop.permute.xlu1 %1008 }
 0x6f4   :  { %v2409_v26 = vpop.permute.xlu0 %836  ;;  %v2411_v27 = vpop.permute.xlu1 %964 }
 0x6f8   :  { %v2413_v28 = vpop.permute.xlu0 %876  ;;  %v2415_v29 = vpop.permute.xlu1 %920 }
 0x6fc   :  { %v2417_v30 = vpop.permute.xlu0 %880  ;;  %v2419_v31 = vpop.permute.xlu1 %751 }
 0x700   :  { %v967_v33 = vpop.permute.xlu0 %966  ;;  %v2424_v61 = vpop.permute.xlu1 %792 }
 0x701   :  { %v974_v53 = vsel %vm972_vm4, %v967_v33, %v2405_v24  ;;  %v975_v12 = vsel %vm972_vm4, %v2411_v27, %v967_v33 }
 0x704   :  { %v1007_v39 = vpop.permute.xlu0 %1006  ;;  %v2434_v40 = vpop.permute.xlu1 %840 }
 0x705   :  { %v1014_v54 = vsel %vm1012_vm5, %v1007_v39, %v1009_v46  ;;  %v1015_v55 = vsel %vm1012_vm5, %v2403_v23, %v1007_v39 }
 0x706   :  { %v1040_v6 = vmul.f32 %v2437_v41, %v1015_v55  ;;  %v1041_v13 = vmul.f32 %v2440_v42, %v1014_v54  ;;  %v1000_v54 = vmul.f32 %v2428_v37, %v975_v12 }
 0x708   :  { %v1051_v56 = vpop.permute.xlu1 %1050  ;;  %v1055_v57 = vpop.permute.xlu0 %1054 }
 0x709   :  { %v1058_v59 = vsel %vm1056_vm6, %v1051_v56, %v1053_v22  ;;  %v1059_v60 = vsel %vm1056_vm6, %v1049_v21, %v1051_v56  ;;  %v1057_v62 = vsel %vm1056_vm6, %v1053_v22, %v1055_v57  ;;  %v1060_v63 = vsel %vm1056_vm6, %v1055_v57, %v1049_v21 }
 0x70a   :  { %v1084_v1 = vmul.f32 %v2444_v43, %v1059_v60  ;;  %v1085_v7 = vmul.f32 %v2447_v44, %v1058_v59  ;;  %v1086_v8 = vmul.f32 %v2450_v45, %v1057_v62  ;;  %v1087_v10 = vmul.f32 %v2453_v47, %v1060_v63 }
 0x70b   :  { %v1001_v57 = vmul.f32 %v2431_v38, %v974_v53  ;;  %v2514_v53 = vrot.slane %v934_v0, %v2195_v4  ;;  %v2517_v60 = vrot.slane %v934_v0, %v2197_v5 }
 0x70c   :  { %v1088_v21 = vpack.c.bf16 %v1084_v1, %v1084_v1  ;;  %v1089_v22 = vpack.c.bf16 %v1085_v7, %v1085_v7  ;;  %v1090_v35 = vpack.c.bf16 %v1086_v8, %v1086_v8  ;;  %v1091_v36 = vpack.c.bf16 %v1087_v10, %v1087_v10  ;;  %v923_v39 = vpop.permute.xlu1 %922  ;;  %v1011_v56 = vpop.permute.xlu0 %1010 }
 0x70d   :  { %v930_v59 = vsel %vm928_vm7, %v923_v39, %v2407_v25  ;;  %v931_v33 = vsel %vm928_vm7, %v2415_v29, %v923_v39  ;;  %v1013_v34 = vsel %vm1012_vm5, %v1009_v46, %v1011_v56  ;;  %v1016_v55 = vsel %vm1012_vm5, %v1011_v56, %v2403_v23  ;;  %v850_v56 = vld [vmem:[#allocation9 + $0x2] ss:$8 sm:$0xf] }
 0x70e   :  { %1820 = vmatprep.subr.msk.bf16.mxu1 %vm321_vm2, %v1089_v22  ;;  %v957_v62 = vmul.f32 %v2460_v49, %v930_v59  ;;  %1822 = vmatprep.subr.msk.bf16.mxu0 %vm321_vm2, %v1091_v36  ;;  %v1096_v46 = vsel %vm321_vm2, %v1088_v21, 0  ;;  %v1102_v63 = vsel %vm321_vm2, %v1090_v35, 0  ;;  %v1045_v1 = vpack.c.bf16 %v1041_v13, %v1001_v57  ;;  %v890_v57 = vld [vmem:[#allocation9 + $0x3] ss:$8 sm:$0xf] }
 0x70f   :  { %v1044_v7 = vpack.c.bf16 %v1040_v6, %v1000_v54  ;;  %v956_v23 = vmul.f32 %v2457_v48, %v931_v33  ;;  %v1042_v8 = vmul.f32 %v2463_v50, %v1013_v34  ;;  %1114 = vmatpush1.bf16.msra.mxu1 %v1096_v46  ;;  %1155 = vmatpush1.bf16.msra.mxu0 %v1102_v63 }
 0x710   :  { %v971_v10 = vpop.permute.xlu1 %970  ;;  %v927_v12 = vpop.permute.xlu0 %926  ;;  %v1043_v0 = vmul.f32 %v2466_v52, %v1016_v55  ;;  %1115 = vmatprep.subr.bf16.mxu1 %v1045_v1  ;;  %v2545_v54 = vrot.slane %v850_v56, %v2193_v3  ;;  %v2560_v1 = vrot.slane %v890_v57, %v2197_v5 }
 0x711   :  { %v973_v22 = vsel %vm972_vm4, %v2405_v24, %v971_v10  ;;  %v976_v13 = vsel %vm972_vm4, %v971_v10, %v2411_v27  ;;  %v932_v6 = vsel %vm928_vm7, %v927_v12, %v2415_v29  ;;  %v929_v36 = vsel %vm928_vm7, %v2407_v25, %v927_v12  ;;  %v766_v25 = vld [vmem:[#allocation9] ss:$8 sm:$0xf] }
 0x712   :  { %v1002_v21 = vmul.f32 %v2477_v58, %v973_v22  ;;  %v1003_v35 = vmul.f32 %v2497_v11, %v976_v13  ;;  %v959_v39 = vmul.f32 %v2517_v60, %v932_v6  ;;  %v961_v24 = vpack.c.bf16 %v957_v62, %v2359_v19 }
 0x713   :  { %1116 = vmatpush1.bf16.msra.mxu1 %v1044_v7  ;;  %v958_v34 = vmul.f32 %v2514_v53, %v929_v36  ;;  %v960_v55 = vpack.c.bf16 %v956_v23, %v2331_v17  ;;  %v2550_v19 = vrot.slane %v890_v57, %v2191_v2  ;;  %v2553_v62 = vrot.slane %v890_v57, %v2193_v3  ;;  %v806_v17 = vld [vmem:[#allocation9 + $0x1] ss:$8 sm:$0xf] }
 0x714   :  { %v1046_v59 = vpack.c.bf16 %v1042_v8, %v1002_v21  ;;  %v839_v27 = vpop.permute.xlu1 %838  ;;  %v883_v29 = vpop.permute.xlu0 %882  ;;  %v1047_v33 = vpack.c.bf16 %v1043_v0, %v1003_v35  ;;  %1117 = vmatprep.subr.bf16.mxu1 %v961_v24  ;;  %v963_v46 = vpack.c.bf16 %v959_v39, %v2369_v20  ;;  %v2563_v7 = vrot.slane %v890_v57, %v2195_v4 }
 0x715   :  { %v847_v63 = vsel %vm844_vm8, %v2409_v26, %v839_v27  ;;  %v2567_v8 = vrot.slane %v766_v25, %v2193_v3  ;;  %v2570_v10 = vrot.slane %v850_v56, %v2191_v2  ;;  %v2573_v12 = vrot.slane %v850_v56, %v2197_v5 }
 0x716   :  { %1156 = vmatprep.subr.bf16.mxu0 %v1047_v33  ;;  %v962_v0 = vpack.c.bf16 %v958_v34, %v2333_v18  ;;  %v885_v22 = vsel %vm884_vm9, %v2417_v30, %v883_v29  ;;  %v888_v13 = vsel %vm884_vm9, %v883_v29, %v2413_v28  ;;  %v873_v21 = vmul.f32 %v2545_v54, %v847_v63 }
 0x717   :  { %1157 = vmatpush1.bf16.msra.mxu0 %v1046_v59  ;;  %1118 = vmatpush1.bf16.msra.mxu1 %v960_v55  ;;  %v2592_v36 = vrot.slane %v806_v17, %v2193_v3  ;;  %v2595_v39 = vrot.slane %v850_v56, %v2195_v4  ;;  %v2604_v57 = vrot.slane %v806_v17, %v2191_v2 }
 0x718   :  { %v879_v23 = vpop.permute.xlu1 %878  ;;  %1158 = vmatprep.subr.bf16.mxu0 %v963_v46  ;;  %v754_v20 = vpop.permute.xlu0 %753  ;;  %v912_v3 = vmul.f32 %v2550_v19, %v888_v13  ;;  %v915_v56 = vmul.f32 %v2560_v1, %v885_v22 }
 0x719   :  { %v887_v6 = vsel %vm884_vm9, %v2413_v28, %v879_v23  ;;  %v886_v35 = vsel %vm884_vm9, %v879_v23, %v2417_v30  ;;  %v764_v24 = vsel %vm761_vm10, %v2419_v31, %v754_v20  ;;  %v2601_v28 = vrot.slane %v766_v25, %v2191_v2 }
 0x71a   :  { %v913_v18 = vmul.f32 %v2553_v62, %v887_v6  ;;  %v846_v30 = vsel %vm844_vm8, %v839_v27, %v2434_v40  ;;  %v914_v34 = vmul.f32 %v2563_v7, %v886_v35  ;;  %v789_v46 = vmul.f32 %v2567_v8, %v764_v24 }
 0x71b   :  { %1159 = vmatpush1.bf16.msra.mxu0 %v962_v0  ;;  %v874_v22 = vmul.f32 %v2595_v39, %v846_v30 }
 0x71c   :  { %v843_v59 = vpop.permute.xlu1 %842  ;;  %v795_v29 = vpop.permute.xlu0 %794  ;;  %v917_v33 = vpack.c.bf16 %v913_v18, %v873_v21  ;;  %v2630_v18 = vrot.slane %v766_v25, %v2197_v5 }
 0x71d   :  { %v845_v55 = vsel %vm844_vm8, %v2434_v40, %v843_v59  ;;  %v848_v2 = vsel %vm844_vm8, %v843_v59, %v2409_v26  ;;  %v803_v27 = vsel %vm800_vm11, %v2424_v61, %v795_v29  ;;  %v2627_v40 = vrot.slane %v766_v25, %v2195_v4 }
 0x71e   :  { %v872_v63 = vmul.f32 %v2570_v10, %v848_v2  ;;  %v875_v23 = vmul.f32 %v2573_v12, %v845_v55  ;;  %v829_v0 = vmul.f32 %v2592_v36, %v803_v27  ;;  %1119 = vmatprep.subr.bf16.mxu1 %v917_v33  ;;  %v918_v24 = vpack.c.bf16 %v914_v34, %v874_v22 }
 0x71f   :  { %v2639_v33 = vrot.slane %v806_v17, %v2195_v4  ;;  %v2644_v25 = vrot.slane %v806_v17, %v2197_v5 }
 0x720   :  { %v916_v13 = vpack.c.bf16 %v912_v3, %v872_v63  ;;  %v758_v26 = vpop.permute.xlu1 %757  ;;  %v799_v6 = vpop.permute.xlu0 %798  ;;  %v919_v21 = vpack.c.bf16 %v915_v56, %v875_v23  ;;  %v833_v35 = vpack.c.bf16 %v829_v0, %v789_v46  ;;  %v750_v23 = vld [vmem:[%s3043_s7] sm:$0xf] }
 0x721   :  { %v765_v59 = vsel %vm761_vm10, %v758_v26, %v2419_v31  ;;  %v804_v30 = vsel %vm800_vm11, %v799_v6, %v2424_v61 }
 0x722   :  { %v788_v3 = vmul.f32 %v2601_v28, %v765_v59  ;;  %v828_v56 = vmul.f32 %v2604_v57, %v804_v30  ;;  %1120 = vmatpush1.bf16.msra.mxu1 %v916_v13  ;;  %1160 = vmatprep.subr.bf16.mxu0 %v919_v21 }
 0x723   :  { %1121 = vmatprep.subr.bf16.mxu1 %v833_v35  ;;  %1161 = vmatpush1.bf16.msra.mxu0 %v918_v24 }
 0x724   :  { %v832_v34 = vpack.c.bf16 %v828_v56, %v788_v3  ;;  %v756_v31 = vpop.permute.xlu1 %755  ;;  %v797_v55 = vpop.permute.xlu0 %796 }
 0x725   :  { %v762_v61 = vsel %vm761_vm10, %v756_v31, %v758_v26  ;;  %v763_v4 = vsel %vm761_vm10, %v754_v20, %v756_v31  ;;  %v801_v2 = vsel %vm800_vm11, %v797_v55, %v799_v6  ;;  %v802_v27 = vsel %vm800_vm11, %v795_v29, %v797_v55 }
 0x726   :  { %v790_v5 = vmul.f32 %v2627_v40, %v763_v4  ;;  %v791_v17 = vmul.f32 %v2630_v18, %v762_v61  ;;  %v830_v46 = vmul.f32 %v2639_v33, %v802_v27  ;;  %v831_v63 = vmul.f32 %v2644_v25, %v801_v2  ;;  %1122 = vmatpush1.bf16.msra.mxu1 %v832_v34 }
 0x728   :  { %v834_v20 = vpack.c.bf16 %v830_v46, %v790_v5  ;;  %v835_v0 = vpack.c.bf16 %v831_v63, %v791_v17 }
 0x729   :  { %1821 = vmatmul.mubr.msk.bf16.vlgmr.msra.gmra.mxu1 %vm317_vm3, %v750_v23 }
 0x72a   :  { %1162 = vmatprep.subr.bf16.mxu0 %v835_v0  ;;  %1418 = vmatprep.mubr.bf16.mxu1 %v2107_v51 }
 0x72b   :  { %1163 = vmatpush1.bf16.msra.mxu0 %v834_v20 }
 0x72e   :  { %1823 = vmatmul.mubr.msk.bf16.vlgmr.msra.gmra.mxu0 %vm317_vm3, %v750_v23 }
 0x72f   :  { %1459 = vmatprep.mubr.bf16.mxu0 %v2107_v51 }
 0x7e9   :  { %v1141_v29 = vpop.f32.mrf.mxu1 }
 0x7ea   :  { %v1195_v22 = vmul.f32 %v1141_v29, %v1141_v29 }
 0x7eb   :  { %v1143_v13 = vpop.f32.mrf.mxu1 }
 0x7ec   :  { %v1189_v26 = vadd.f32 %v1143_v13, %v1141_v29  ;;  %v1196_v6 = vmul.f32 %v1143_v13, %v1143_v13 }
 0x7ed   :  { %v1145_v21 = vpop.f32.mrf.mxu1 }
 0x7ee   :  { %v1182_v35 = vpop.f32.mrf.mxu0  ;;  %v1199_v24 = vadd.f32 %v1196_v6, %v1195_v22 }
 0x7ef   :  { %v1197_v59 = vmul.f32 %v1182_v35, %v1182_v35  ;;  %v1146_v30 = vpop.f32.mrf.mxu1  ;;  %v1190_v3 = vadd.f32 %v1189_v26, %v1182_v35 }
 0x7f0   :  { %v1184_v56 = vpop.f32.mrf.mxu0 }
 0x7f1   :  { %v1191_v34 = vadd.f32 %v1190_v3, %v1184_v56  ;;  %v1198_v31 = vmul.f32 %v1184_v56, %v1184_v56  ;;  %v1200_v55 = vadd.f32 %v1199_v24, %v1197_v59 }
 0x7f2   :  { %v1186_v61 = vpop.f32.mrf.mxu0 }
 0x7f3   :  { %1192 = vadd.xlane.f32.xlu1 %v1191_v34  ;;  %v1201_v4 = vadd.f32 %v1200_v55, %v1198_v31 }
 0x7f4   :  { %v1187_v2 = vpop.f32.mrf.mxu0 }
 0x7f5   :  { %1202 = vadd.xlane.f32.xlu0 %v1201_v4 }
 0x87c   :  { %v1193_v27 = vpop.xlane.xlu1 %1192 }
 0x87d   :  { %v1194_v5 = vmul.f32 0.001953125, %v1193_v27 }
 0x87e   :  { %v1203_v17 = vpop.xlane.xlu0 %1202 }
 0x87f   :  { %v1204_v46 = vmul.f32 0.001953125, %v1203_v17  ;;  %v1205_v63 = vmul.f32 %v1194_v5, %v1194_v5  ;;  %v1210_v22 = vsub.f32 %v1141_v29, %v1194_v5  ;;  %v1211_v26 = vsub.f32 %v1143_v13, %v1194_v5 }
 0x880   :  { %v1212_v6 = vsub.f32 %v1182_v35, %v1194_v5  ;;  %v1213_v55 = vsub.f32 %v1184_v56, %v1194_v5 }
 0x881   :  { %v1206_v23 = vsub.f32 %v1204_v46, %v1205_v63  ;;  %v1214_v21 = vmax.f32 %v1210_v22, 0.0  ;;  %v1215_v30 = vmax.f32 %v1211_v26, 0.0 }
 0x882   :  { %v1216_v34 = vmax.f32 %v1212_v6, 0.0  ;;  %v1217_v29 = vmax.f32 %v1213_v55, 0.0 }
 0x883   :  { %v1207_v20 = vmax.f32 %v1206_v23, 0.0 }
 0x885   :  { %v1208_v0 = vadd.f32 1e-05, %v1207_v20 }
 0x887   :  { %1967 = vrsqrt.f32 %v1208_v0 }
 0x894   :  { %v1968_v24 = vpop.eup %1967 }
 0x895   :  { %v2665_v59 = vmul.f32 %v1968_v24, %v1215_v30  ;;  %v2667_v3 = vmul.f32 %v1968_v24, %v1214_v21  ;;  %v2673_v31 = vmul.f32 %v1968_v24, %v1216_v34  ;;  %v2683_v13 = vmul.f32 %v1968_v24, %v1217_v29 }
 0x897   :  { %1353 = vrot.lane.b32.xlu1 %v2665_v59, %s2108_s4  ;;  %1351 = vrot.lane.b32.xlu0 %v2667_v3, %s2108_s4 }
 0x89b   :  { %1355 = vrot.lane.b32.xlu1 %v2673_v31, %s2108_s4  ;;  %1317 = vrot.lane.b32.xlu0 %v2665_v59, %s2110_s12 }
 0x89f   :  { %1319 = vrot.lane.b32.xlu1 %v2673_v31, %s2110_s12  ;;  %1333 = vrot.lane.b32.xlu0 %v2665_v59, %s2109_s30 }
 0x8a3   :  { %1335 = vrot.lane.b32.xlu1 %v2673_v31, %s2109_s30  ;;  %1357 = vrot.lane.b32.xlu0 %v2683_v13, %s2108_s4 }
 0x8a7   :  { %1315 = vrot.lane.b32.xlu1 %v2667_v3, %s2110_s12  ;;  %1331 = vrot.lane.b32.xlu0 %v2667_v3, %s2109_s30 }
 0x8ab   :  { %1297 = vrot.lane.b32.xlu1 %v2665_v59, %s2103_s26  ;;  %1299 = vrot.lane.b32.xlu0 %v2673_v31, %s2103_s26 }
 0x8af   :  { %1321 = vrot.lane.b32.xlu1 %v2683_v13, %s2110_s12  ;;  %1337 = vrot.lane.b32.xlu0 %v2683_v13, %s2109_s30 }
 0x8b3   :  { %1295 = vrot.lane.b32.xlu1 %v2667_v3, %s2103_s26  ;;  %1259 = vrot.lane.b32.xlu0 %v2667_v3, %s2111_s5 }
 0x8b7   :  { %1261 = vrot.lane.b32.xlu1 %v2665_v59, %s2111_s5  ;;  %1275 = vrot.lane.b32.xlu0 %v2667_v3, %s2105_s28 }
 0x8bb   :  { %1277 = vrot.lane.b32.xlu1 %v2665_v59, %s2105_s28  ;;  %1301 = vrot.lane.b32.xlu0 %v2683_v13, %s2103_s26 }
 0x8bf   :  { %1265 = vrot.lane.b32.xlu1 %v2683_v13, %s2111_s5  ;;  %1281 = vrot.lane.b32.xlu0 %v2683_v13, %s2105_s28 }
 0x8c3   :  { %1223 = vrot.lane.b32.xlu1 %v2667_v3, %s2112_s13  ;;  %1225 = vrot.lane.b32.xlu0 %v2665_v59, %s2112_s13 }
 0x8c7   :  { %1239 = vrot.lane.b32.xlu1 %v2667_v3, %s2094_s19  ;;  %1241 = vrot.lane.b32.xlu0 %v2665_v59, %s2094_s19 }
 0x8cb   :  { %1263 = vrot.lane.b32.xlu1 %v2673_v31, %s2111_s5  ;;  %1279 = vrot.lane.b32.xlu0 %v2673_v31, %s2105_s28 }
 0x8cf   :  { %1229 = vrot.lane.b32.xlu1 %v2683_v13, %s2112_s13  ;;  %1245 = vrot.lane.b32.xlu0 %v2683_v13, %s2094_s19 }
 0x8d3   :  { %1227 = vrot.lane.b32.xlu1 %v2673_v31, %s2112_s13  ;;  %1243 = vrot.lane.b32.xlu0 %v2673_v31, %s2094_s19 }
 0x909   :  { %v1354_v35 = vpop.permute.xlu1 %1353  ;;  %v1352_v56 = vpop.permute.xlu0 %1351 }
 0x90a   :  { %v1361_v61 = vsel %vm1056_vm6, %v1352_v56, %v1354_v35 }
 0x90b   :  { %v1363_v4 = vmul.f32 %v1361_v61, %v2444_v43 }
 0x90d   :  { %v1356_v2 = vpop.permute.xlu1 %1355  ;;  %v1318_v27 = vpop.permute.xlu0 %1317  ;;  %v1367_v17 = vpack.c.bf16 %v1363_v4, %v1363_v4 }
 0x90e   :  { %v1360_v5 = vsel %vm1056_vm6, %v1354_v35, %v1356_v2 }
 0x90f   :  { %v1364_v46 = vmul.f32 %v1360_v5, %v2447_v44  ;;  %v1375_v0 = vsel %vm321_vm2, %v1367_v17, 0 }
 0x911   :  { %v1368_v63 = vpack.c.bf16 %v1364_v46, %v1364_v46  ;;  %v1320_v23 = vpop.permute.xlu1 %1319  ;;  %v1334_v20 = vpop.permute.xlu0 %1333 }
 0x912   :  { %v1324_v22 = vsel %vm972_vm4, %v1318_v27, %v1320_v23 }
 0x913   :  { %1824 = vmatprep.subr.msk.bf16.mxu1 %vm321_vm2, %v1368_v63  ;;  %v1328_v34 = vmul.f32 %v1324_v22, %v2431_v38 }
 0x914   :  { %1393 = vmatpush1.bf16.msra.mxu1 %v1375_v0 }
 0x915   :  { %v1336_v26 = vpop.permute.xlu1 %1335  ;;  %v1358_v6 = vpop.permute.xlu0 %1357 }
 0x916   :  { %v1340_v21 = vsel %vm1012_vm5, %v1334_v20, %v1336_v26  ;;  %v1359_v30 = vsel %vm1056_vm6, %v1356_v2, %v1358_v6  ;;  %v1362_v24 = vsel %vm1056_vm6, %v1358_v6, %v1352_v56 }
 0x917   :  { %v1344_v55 = vmul.f32 %v1340_v21, %v2440_v42  ;;  %v1365_v29 = vmul.f32 %v1359_v30, %v2450_v45  ;;  %v1366_v35 = vmul.f32 %v1362_v24, %v2453_v47 }
 0x919   :  { %v1369_v61 = vpack.c.bf16 %v1365_v29, %v1365_v29  ;;  %v1370_v4 = vpack.c.bf16 %v1366_v35, %v1366_v35  ;;  %v1316_v5 = vpop.permute.xlu1 %1315  ;;  %v1332_v17 = vpop.permute.xlu0 %1331  ;;  %v1348_v46 = vpack.c.bf16 %v1344_v55, %v1328_v34 }
 0x91a   :  { %v1325_v63 = vsel %vm972_vm4, %v1316_v5, %v1318_v27  ;;  %v1341_v2 = vsel %vm1012_vm5, %v1332_v17, %v1334_v20 }
 0x91b   :  { %v1327_v56 = vmul.f32 %v1325_v63, %v2428_v37  ;;  %v1343_v0 = vmul.f32 %v1341_v2, %v2437_v41  ;;  %1394 = vmatprep.subr.bf16.mxu1 %v1348_v46  ;;  %1826 = vmatprep.subr.msk.bf16.mxu0 %vm321_vm2, %v1370_v4  ;;  %v1381_v22 = vsel %vm321_vm2, %v1369_v61, 0 }
 0x91c   :  { %1434 = vmatpush1.bf16.msra.mxu0 %v1381_v22 }
 0x91d   :  { %v1347_v6 = vpack.c.bf16 %v1343_v0, %v1327_v56  ;;  %v1298_v21 = vpop.permute.xlu1 %1297  ;;  %v1300_v30 = vpop.permute.xlu0 %1299 }
 0x91e   :  { %v1304_v24 = vsel %vm928_vm7, %v1298_v21, %v1300_v30 }
 0x91f   :  { %v1308_v27 = vmul.f32 %v1304_v24, %v2460_v49  ;;  %1395 = vmatpush1.bf16.msra.mxu1 %v1347_v6 }
 0x921   :  { %v1322_v20 = vpop.permute.xlu1 %1321  ;;  %v1338_v34 = vpop.permute.xlu0 %1337  ;;  %v1312_v55 = vpack.c.bf16 %v1308_v27, %v2665_v59 }
 0x922   :  { %v1323_v29 = vsel %vm972_vm4, %v1320_v23, %v1322_v20  ;;  %v1326_v35 = vsel %vm972_vm4, %v1322_v20, %v1316_v5  ;;  %v1339_v61 = vsel %vm1012_vm5, %v1336_v26, %v1338_v34  ;;  %v1342_v4 = vsel %vm1012_vm5, %v1338_v34, %v1332_v17 }
 0x923   :  { %v1329_v46 = vmul.f32 %v1323_v29, %v2477_v58  ;;  %v1330_v63 = vmul.f32 %v1326_v35, %v2497_v11  ;;  %v1345_v2 = vmul.f32 %v1339_v61, %v2463_v50  ;;  %v1346_v59 = vmul.f32 %v1342_v4, %v2466_v52  ;;  %1396 = vmatprep.subr.bf16.mxu1 %v1312_v55 }
 0x925   :  { %v1349_v56 = vpack.c.bf16 %v1345_v2, %v1329_v46  ;;  %v1296_v23 = vpop.permute.xlu1 %1295  ;;  %v1260_v0 = vpop.permute.xlu0 %1259  ;;  %v1350_v22 = vpack.c.bf16 %v1346_v59, %v1330_v63 }
 0x926   :  { %v1305_v5 = vsel %vm928_vm7, %v1296_v23, %v1298_v21 }
 0x927   :  { %v1307_v26 = vmul.f32 %v1305_v5, %v2457_v48  ;;  %1435 = vmatprep.subr.bf16.mxu0 %v1350_v22 }
 0x928   :  { %1436 = vmatpush1.bf16.msra.mxu0 %v1349_v56 }
 0x929   :  { %v1311_v17 = vpack.c.bf16 %v1307_v26, %v2667_v3  ;;  %v1262_v6 = vpop.permute.xlu1 %1261  ;;  %v1276_v24 = vpop.permute.xlu0 %1275 }
 0x92a   :  { %v1269_v27 = vsel %vm844_vm8, %v1260_v0, %v1262_v6 }
 0x92b   :  { %1397 = vmatpush1.bf16.msra.mxu1 %v1311_v17  ;;  %v1272_v35 = vmul.f32 %v1269_v27, %v2545_v54 }
 0x92d   :  { %v1278_v20 = vpop.permute.xlu1 %1277  ;;  %v1302_v34 = vpop.permute.xlu0 %1301 }
 0x92e   :  { %v1285_v55 = vsel %vm884_vm9, %v1276_v24, %v1278_v20  ;;  %v1303_v21 = vsel %vm928_vm7, %v1300_v30, %v1302_v34  ;;  %v1306_v29 = vsel %vm928_vm7, %v1302_v34, %v1296_v23 }
 0x92f   :  { %v1288_v3 = vmul.f32 %v1285_v55, %v2553_v62  ;;  %v1309_v61 = vmul.f32 %v1303_v21, %v2514_v53  ;;  %v1310_v4 = vmul.f32 %v1306_v29, %v2517_v60 }
 0x931   :  { %v1313_v46 = vpack.c.bf16 %v1309_v61, %v2673_v31  ;;  %v1266_v63 = vpop.permute.xlu1 %1265  ;;  %v1282_v2 = vpop.permute.xlu0 %1281  ;;  %v1292_v59 = vpack.c.bf16 %v1288_v3, %v1272_v35  ;;  %v1314_v56 = vpack.c.bf16 %v1310_v4, %v2683_v13 }
 0x932   :  { %v1270_v30 = vsel %vm844_vm8, %v1266_v63, %v1260_v0  ;;  %v1286_v23 = vsel %vm884_vm9, %v1282_v2, %v1276_v24 }
 0x933   :  { %v1271_v22 = vmul.f32 %v1270_v30, %v2570_v10  ;;  %v1287_v5 = vmul.f32 %v1286_v23, %v2550_v19  ;;  %1398 = vmatprep.subr.bf16.mxu1 %v1292_v59  ;;  %1437 = vmatprep.subr.bf16.mxu0 %v1314_v56 }
 0x934   :  { %1438 = vmatpush1.bf16.msra.mxu0 %v1313_v46 }
 0x935   :  { %v1291_v26 = vpack.c.bf16 %v1287_v5, %v1271_v22  ;;  %v1224_v31 = vpop.permute.xlu1 %1223  ;;  %v1226_v17 = vpop.permute.xlu0 %1225 }
 0x936   :  { %v1233_v13 = vsel %vm761_vm10, %v1224_v31, %v1226_v17 }
 0x937   :  { %1399 = vmatpush1.bf16.msra.mxu1 %v1291_v26  ;;  %v1236_v24 = vmul.f32 %v1233_v13, %v2567_v8 }
 0x939   :  { %v1240_v27 = vpop.permute.xlu1 %1239  ;;  %v1242_v34 = vpop.permute.xlu0 %1241 }
 0x93a   :  { %v1249_v0 = vsel %vm800_vm11, %v1240_v27, %v1242_v34 }
 0x93b   :  { %v1252_v55 = vmul.f32 %v1249_v0, %v2592_v36 }
 0x93d   :  { %v1264_v21 = vpop.permute.xlu1 %1263  ;;  %v1280_v29 = vpop.permute.xlu0 %1279  ;;  %v1256_v35 = vpack.c.bf16 %v1252_v55, %v1236_v24 }
 0x93e   :  { %v1267_v3 = vsel %vm844_vm8, %v1264_v21, %v1266_v63  ;;  %v1268_v61 = vsel %vm844_vm8, %v1262_v6, %v1264_v21  ;;  %v1283_v4 = vsel %vm884_vm9, %v1280_v29, %v1282_v2  ;;  %v1284_v46 = vsel %vm884_vm9, %v1278_v20, %v1280_v29 }
 0x93f   :  { %v1273_v59 = vmul.f32 %v1268_v61, %v2595_v39  ;;  %v1274_v56 = vmul.f32 %v1267_v3, %v2573_v12  ;;  %v1289_v30 = vmul.f32 %v1284_v46, %v2563_v7  ;;  %v1290_v23 = vmul.f32 %v1283_v4, %v2560_v1  ;;  %1400 = vmatprep.subr.bf16.mxu1 %v1256_v35  ;;  %v1222_v46 = vld [vmem:[#allocation7] sm:$0xf] }
 0x941   :  { %v1293_v22 = vpack.c.bf16 %v1289_v30, %v1273_v59  ;;  %v1230_v63 = vpop.permute.xlu1 %1229  ;;  %v1246_v5 = vpop.permute.xlu0 %1245  ;;  %v1294_v26 = vpack.c.bf16 %v1290_v23, %v1274_v56 }
 0x942   :  { %v1234_v6 = vsel %vm761_vm10, %v1230_v63, %v1224_v31  ;;  %v1250_v2 = vsel %vm800_vm11, %v1246_v5, %v1240_v27 }
 0x943   :  { %v1235_v20 = vmul.f32 %v1234_v6, %v2601_v28  ;;  %v1251_v13 = vmul.f32 %v1250_v2, %v2604_v57  ;;  %1439 = vmatprep.subr.bf16.mxu0 %v1294_v26 }
 0x944   :  { %1440 = vmatpush1.bf16.msra.mxu0 %v1293_v22 }
 0x945   :  { %v1255_v0 = vpack.c.bf16 %v1251_v13, %v1235_v20  ;;  %v1228_v24 = vpop.permute.xlu1 %1227  ;;  %v1244_v55 = vpop.permute.xlu0 %1243 }
 0x946   :  { %v1231_v21 = vsel %vm761_vm10, %v1228_v24, %v1230_v63  ;;  %v1232_v29 = vsel %vm761_vm10, %v1226_v17, %v1228_v24  ;;  %v1247_v31 = vsel %vm800_vm11, %v1244_v55, %v1246_v5  ;;  %v1248_v27 = vsel %vm800_vm11, %v1242_v34, %v1244_v55 }
 0x947   :  { %v1237_v35 = vmul.f32 %v1232_v29, %v2627_v40  ;;  %v1238_v3 = vmul.f32 %v1231_v21, %v2630_v18  ;;  %v1253_v61 = vmul.f32 %v1248_v27, %v2639_v33  ;;  %v1254_v4 = vmul.f32 %v1247_v31, %v2644_v25  ;;  %1401 = vmatpush1.bf16.msra.mxu1 %v1255_v0 }
 0x949   :  { %v1257_v59 = vpack.c.bf16 %v1253_v61, %v1237_v35  ;;  %v1258_v56 = vpack.c.bf16 %v1254_v4, %v1238_v3 }
 0x94a   :  { %1825 = vmatmul.mubr.msk.bf16.vlgmr.msra.gmra.mxu1 %vm317_vm3, %v1222_v46 }
 0x94b   :  { %1441 = vmatprep.subr.bf16.mxu0 %v1258_v56  ;;  %1697 = vmatprep.mubr.bf16.mxu1 %v2107_v51 }
 0x94c   :  { %1442 = vmatpush1.bf16.msra.mxu0 %v1257_v59 }
 0x94f   :  { %1827 = vmatmul.mubr.msk.bf16.vlgmr.msra.gmra.mxu0 %vm317_vm3, %v1222_v46 }
 0x950   :  { %1738 = vmatprep.mubr.bf16.mxu0 %v2107_v51 }
 0xa0a   :  { %v1420_v17 = vpop.f32.mrf.mxu1 }
 0xa0b   :  { %v1421_v34 = vadd.f32 %v1420_v17, %v2323_v14 }
 0xa0c   :  { %v1422_v30 = vpop.f32.mrf.mxu1 }
 0xa0d   :  { %v1423_v23 = vadd.f32 %v1422_v30, %v2327_v15  ;;  %v1474_v63 = vmul.f32 %v1421_v34, %v1421_v34 }
 0xa0e   :  { %v1424_v22 = vpop.f32.mrf.mxu1 }
 0xa0f   :  { %v1468_v5 = vadd.f32 %v1423_v23, %v1421_v34  ;;  %v1475_v26 = vmul.f32 %v1423_v23, %v1423_v23  ;;  %v1461_v6 = vpop.f32.mrf.mxu0 }
 0xa10   :  { %v1462_v2 = vadd.f32 %v1461_v6, %v2325_v9  ;;  %v1425_v20 = vpop.f32.mrf.mxu1 }
 0xa11   :  { %v1463_v13 = vpop.f32.mrf.mxu0  ;;  %v1478_v0 = vadd.f32 %v1475_v26, %v1474_v63 }
 0xa12   :  { %v1476_v24 = vmul.f32 %v1462_v2, %v1462_v2  ;;  %v1464_v55 = vadd.f32 %v1463_v13, %v2329_v16  ;;  %v1469_v51 = vadd.f32 %v1468_v5, %v1462_v2 }
 0xa13   :  { %v1465_v21 = vpop.f32.mrf.mxu0 }
 0xa14   :  { %v1470_v29 = vadd.f32 %v1469_v51, %v1464_v55  ;;  %v1477_v14 = vmul.f32 %v1464_v55, %v1464_v55  ;;  %v1479_v31 = vadd.f32 %v1478_v0, %v1476_v24 }
 0xa15   :  { %v1466_v27 = vpop.f32.mrf.mxu0 }
 0xa16   :  { %1471 = vadd.xlane.f32.xlu1 %v1470_v29  ;;  %v1480_v15 = vadd.f32 %v1479_v31, %v1477_v14 }
 0xa18   :  { %1481 = vadd.xlane.f32.xlu0 %v1480_v15 }
 0xa9f   :  { %v1472_v35 = vpop.xlane.xlu1 %1471 }
 0xaa0   :  { %v1473_v3 = vmul.f32 0.001953125, %v1472_v35 }
 0xaa1   :  { %v1482_v61 = vpop.xlane.xlu0 %1481 }
 0xaa2   :  { %v1483_v4 = vmul.f32 0.001953125, %v1482_v61  ;;  %v1484_v9 = vmul.f32 %v1473_v3, %v1473_v3  ;;  %v1489_v17 = vsub.f32 %v1421_v34, %v1473_v3  ;;  %v1490_v16 = vsub.f32 %v1423_v23, %v1473_v3 }
 0xaa3   :  { %v1491_v30 = vsub.f32 %v1462_v2, %v1473_v3  ;;  %v1492_v22 = vsub.f32 %v1464_v55, %v1473_v3 }
 0xaa4   :  { %v1485_v46 = vsub.f32 %v1483_v4, %v1484_v9  ;;  %v1493_v63 = vmax.f32 %v1489_v17, 0.0  ;;  %v1494_v5 = vmax.f32 %v1490_v16, 0.0 }
 0xaa5   :  { %v1495_v13 = vmax.f32 %v1491_v30, 0.0  ;;  %v1496_v0 = vmax.f32 %v1492_v22, 0.0 }
 0xaa6   :  { %v1486_v59 = vmax.f32 %v1485_v46, 0.0 }
 0xaa8   :  { %v1487_v56 = vadd.f32 1e-05, %v1486_v59 }
 0xaaa   :  { %1969 = vrsqrt.f32 %v1487_v56 }
 0xab7   :  { %v1970_v26 = vpop.eup %1969 }
 0xab8   :  { %v2849_v6 = vmul.f32 %v1970_v26, %v1494_v5  ;;  %v2851_v20 = vmul.f32 %v1970_v26, %v1493_v63  ;;  %v2857_v24 = vmul.f32 %v1970_v26, %v1495_v13  ;;  %v2859_v34 = vmul.f32 %v1970_v26, %v1496_v0 }
 0xaba   :  { %1632 = vrot.lane.b32.xlu1 %v2849_v6, %s2108_s4  ;;  %1630 = vrot.lane.b32.xlu0 %v2851_v20, %s2108_s4 }
 0xabe   :  { %1634 = vrot.lane.b32.xlu1 %v2857_v24, %s2108_s4  ;;  %1636 = vrot.lane.b32.xlu0 %v2859_v34, %s2108_s4 }
 0xac2   :  { %1594 = vrot.lane.b32.xlu1 %v2851_v20, %s2110_s12  ;;  %1596 = vrot.lane.b32.xlu0 %v2849_v6, %s2110_s12 }
 0xac6   :  { %1598 = vrot.lane.b32.xlu1 %v2857_v24, %s2110_s12  ;;  %1600 = vrot.lane.b32.xlu0 %v2859_v34, %s2110_s12 }
 0xaca   :  { %1610 = vrot.lane.b32.xlu1 %v2851_v20, %s2109_s30  ;;  %1612 = vrot.lane.b32.xlu0 %v2849_v6, %s2109_s30 }
 0xace   :  { %1614 = vrot.lane.b32.xlu1 %v2857_v24, %s2109_s30  ;;  %1616 = vrot.lane.b32.xlu0 %v2859_v34, %s2109_s30 }
 0xad2   :  { %1574 = vrot.lane.b32.xlu1 %v2851_v20, %s2103_s26  ;;  %1576 = vrot.lane.b32.xlu0 %v2849_v6, %s2103_s26 }
 0xad6   :  { %1578 = vrot.lane.b32.xlu1 %v2857_v24, %s2103_s26  ;;  %1580 = vrot.lane.b32.xlu0 %v2859_v34, %s2103_s26 }
 0xada   :  { %1538 = vrot.lane.b32.xlu1 %v2851_v20, %s2111_s5  ;;  %1540 = vrot.lane.b32.xlu0 %v2849_v6, %s2111_s5 }
 0xade   :  { %1542 = vrot.lane.b32.xlu1 %v2857_v24, %s2111_s5  ;;  %1544 = vrot.lane.b32.xlu0 %v2859_v34, %s2111_s5 }
 0xae2   :  { %1554 = vrot.lane.b32.xlu1 %v2851_v20, %s2105_s28  ;;  %1556 = vrot.lane.b32.xlu0 %v2849_v6, %s2105_s28 }
 0xae6   :  { %1558 = vrot.lane.b32.xlu1 %v2857_v24, %s2105_s28  ;;  %1560 = vrot.lane.b32.xlu0 %v2859_v34, %s2105_s28 }
 0xaea   :  { %1502 = vrot.lane.b32.xlu1 %v2851_v20, %s2112_s13  ;;  %1504 = vrot.lane.b32.xlu0 %v2849_v6, %s2112_s13 }
 0xaee   :  { %1506 = vrot.lane.b32.xlu1 %v2857_v24, %s2112_s13  ;;  %1508 = vrot.lane.b32.xlu0 %v2859_v34, %s2112_s13 }
 0xaf2   :  { %1518 = vrot.lane.b32.xlu1 %v2851_v20, %s2094_s19  ;;  %1520 = vrot.lane.b32.xlu0 %v2849_v6, %s2094_s19 }
 0xaf6   :  { %1522 = vrot.lane.b32.xlu1 %v2857_v24, %s2094_s19  ;;  %1524 = vrot.lane.b32.xlu0 %v2859_v34, %s2094_s19 }
 0xb2c   :  { %v1633_v23 = vpop.permute.xlu1 %1632  ;;  %v1631_v2 = vpop.permute.xlu0 %1630 }
 0xb2d   :  { %v1640_v55 = vsel %vm1056_vm6, %v1631_v2, %v1633_v23 }
 0xb2e   :  { %v1642_v51 = vmul.f32 %v1640_v55, %v2444_v43 }
 0xb30   :  { %v1635_v21 = vpop.permute.xlu1 %1634  ;;  %v1637_v29 = vpop.permute.xlu0 %1636  ;;  %v1646_v15 = vpack.c.bf16 %v1642_v51, %v1642_v51 }
 0xb31   :  { %v1639_v14 = vsel %vm1056_vm6, %v1633_v23, %v1635_v21  ;;  %v1638_v31 = vsel %vm1056_vm6, %v1635_v21, %v1637_v29  ;;  %v1641_v27 = vsel %vm1056_vm6, %v1637_v29, %v1631_v2 }
 0xb32   :  { %v1643_v35 = vmul.f32 %v1639_v14, %v2447_v44  ;;  %v1644_v3 = vmul.f32 %v1638_v31, %v2450_v45  ;;  %v1645_v61 = vmul.f32 %v1641_v27, %v2453_v47  ;;  %v1654_v56 = vsel %vm321_vm2, %v1646_v15, 0 }
 0xb34   :  { %v1647_v4 = vpack.c.bf16 %v1643_v35, %v1643_v35  ;;  %v1648_v43 = vpack.c.bf16 %v1644_v3, %v1644_v3  ;;  %v1649_v9 = vpack.c.bf16 %v1645_v61, %v1645_v61  ;;  %v1595_v46 = vpop.permute.xlu1 %1594  ;;  %v1597_v59 = vpop.permute.xlu0 %1596 }
 0xb35   :  { %v1604_v26 = vsel %vm972_vm4, %v1595_v46, %v1597_v59 }
 0xb36   :  { %1828 = vmatprep.subr.msk.bf16.mxu1 %vm321_vm2, %v1647_v4  ;;  %1830 = vmatprep.subr.msk.bf16.mxu0 %vm321_vm2, %v1649_v9  ;;  %v1660_v17 = vsel %vm321_vm2, %v1648_v43, 0  ;;  %v1606_v27 = vmul.f32 %v1604_v26, %v2428_v37 }
 0xb37   :  { %1672 = vmatpush1.bf16.msra.mxu1 %v1654_v56  ;;  %1713 = vmatpush1.bf16.msra.mxu0 %v1660_v17 }
 0xb38   :  { %v1599_v44 = vpop.permute.xlu1 %1598  ;;  %v1601_v16 = vpop.permute.xlu0 %1600 }
 0xb39   :  { %v1603_v47 = vsel %vm972_vm4, %v1597_v59, %v1599_v44  ;;  %v1602_v22 = vsel %vm972_vm4, %v1599_v44, %v1601_v16  ;;  %v1605_v5 = vsel %vm972_vm4, %v1601_v16, %v1595_v46 }
 0xb3a   :  { %v1607_v13 = vmul.f32 %v1603_v47, %v2431_v38  ;;  %v1608_v0 = vmul.f32 %v1602_v22, %v2477_v58  ;;  %v1609_v14 = vmul.f32 %v1605_v5, %v2497_v11 }
 0xb3c   :  { %v1611_v45 = vpop.permute.xlu1 %1610  ;;  %v1613_v30 = vpop.permute.xlu0 %1612 }
 0xb3d   :  { %v1620_v63 = vsel %vm1012_vm5, %v1611_v45, %v1613_v30 }
 0xb3e   :  { %v1622_v55 = vmul.f32 %v1620_v63, %v2437_v41 }
 0xb40   :  { %v1615_v23 = vpop.permute.xlu1 %1614  ;;  %v1617_v2 = vpop.permute.xlu0 %1616  ;;  %v1626_v4 = vpack.c.bf16 %v1622_v55, %v1606_v27 }
 0xb41   :  { %v1619_v51 = vsel %vm1012_vm5, %v1613_v30, %v1615_v23  ;;  %v1618_v21 = vsel %vm1012_vm5, %v1615_v23, %v1617_v2  ;;  %v1621_v29 = vsel %vm1012_vm5, %v1617_v2, %v1611_v45 }
 0xb42   :  { %v1623_v31 = vmul.f32 %v1619_v51, %v2440_v42  ;;  %v1624_v38 = vmul.f32 %v1618_v21, %v2463_v50  ;;  %v1625_v58 = vmul.f32 %v1621_v29, %v2466_v52 }
 0xb44   :  { %v1628_v41 = vpack.c.bf16 %v1624_v38, %v1608_v0  ;;  %v1575_v15 = vpop.permute.xlu1 %1574  ;;  %v1577_v35 = vpop.permute.xlu0 %1576  ;;  %v1627_v3 = vpack.c.bf16 %v1623_v31, %v1607_v13  ;;  %v1629_v61 = vpack.c.bf16 %v1625_v58, %v1609_v14 }
 0xb45   :  { %v1584_v43 = vsel %vm928_vm7, %v1575_v15, %v1577_v35 }
 0xb46   :  { %1673 = vmatprep.subr.bf16.mxu1 %v1627_v3  ;;  %1714 = vmatprep.subr.bf16.mxu0 %v1629_v61  ;;  %v1586_v50 = vmul.f32 %v1584_v43, %v2457_v48 }
 0xb47   :  { %1674 = vmatpush1.bf16.msra.mxu1 %v1626_v4  ;;  %1715 = vmatpush1.bf16.msra.mxu0 %v1628_v41 }
 0xb48   :  { %v1579_v42 = vpop.permute.xlu1 %1578  ;;  %v1581_v11 = vpop.permute.xlu0 %1580  ;;  %v1590_v30 = vpack.c.bf16 %v1586_v50, %v2851_v20 }
 0xb49   :  { %v1583_v37 = vsel %vm928_vm7, %v1577_v35, %v1579_v42  ;;  %v1582_v52 = vsel %vm928_vm7, %v1579_v42, %v1581_v11  ;;  %v1585_v9 = vsel %vm928_vm7, %v1581_v11, %v1575_v15 }
 0xb4a   :  { %v1587_v46 = vmul.f32 %v1583_v37, %v2460_v49  ;;  %v1588_v59 = vmul.f32 %v1582_v52, %v2514_v53  ;;  %v1589_v56 = vmul.f32 %v1585_v9, %v2517_v60 }
 0xb4c   :  { %v1592_v17 = vpack.c.bf16 %v1588_v59, %v2857_v24  ;;  %v1539_v44 = vpop.permute.xlu1 %1538  ;;  %v1541_v16 = vpop.permute.xlu0 %1540  ;;  %v1591_v48 = vpack.c.bf16 %v1587_v46, %v2849_v6  ;;  %v1593_v45 = vpack.c.bf16 %v1589_v56, %v2859_v34 }
 0xb4d   :  { %v1548_v53 = vsel %vm844_vm8, %v1539_v44, %v1541_v16 }
 0xb4e   :  { %1675 = vmatprep.subr.bf16.mxu1 %v1591_v48  ;;  %1716 = vmatprep.subr.bf16.mxu0 %v1593_v45  ;;  %v1551_v34 = vmul.f32 %v1548_v53, %v2545_v54 }
 0xb4f   :  { %1676 = vmatpush1.bf16.msra.mxu1 %v1590_v30  ;;  %1717 = vmatpush1.bf16.msra.mxu0 %v1592_v17 }
 0xb50   :  { %v1543_v47 = vpop.permute.xlu1 %1542  ;;  %v1545_v49 = vpop.permute.xlu0 %1544 }
 0xb51   :  { %v1547_v24 = vsel %vm844_vm8, %v1541_v16, %v1543_v47  ;;  %v1549_v20 = vsel %vm844_vm8, %v1545_v49, %v1539_v44  ;;  %v1546_v5 = vsel %vm844_vm8, %v1543_v47, %v1545_v49  ;;  %v1501_v44 = vld [vmem:[%s3046_s10] sm:$0x3] }
 0xb52   :  { %v1552_v26 = vmul.f32 %v1547_v24, %v2595_v39  ;;  %v1550_v2 = vmul.f32 %v1549_v20, %v2570_v10 }
 0xb54   :  { %v1555_v60 = vpop.permute.xlu1 %1554  ;;  %v1557_v22 = vpop.permute.xlu0 %1556 }
 0xb55   :  { %v1564_v6 = vsel %vm884_vm9, %v1555_v60, %v1557_v22 }
 0xb56   :  { %v1567_v63 = vmul.f32 %v1564_v6, %v2553_v62  ;;  %v1553_v62 = vmul.f32 %v1546_v5, %v2573_v12 }
 0xb58   :  { %v1559_v13 = vpop.permute.xlu1 %1558  ;;  %v1561_v0 = vpop.permute.xlu0 %1560  ;;  %v1571_v23 = vpack.c.bf16 %v1567_v63, %v1551_v34 }
 0xb59   :  { %v1563_v55 = vsel %vm884_vm9, %v1557_v22, %v1559_v13  ;;  %v1562_v54 = vsel %vm884_vm9, %v1559_v13, %v1561_v0  ;;  %v1565_v51 = vsel %vm884_vm9, %v1561_v0, %v1555_v60 }
 0xb5a   :  { %v1568_v21 = vmul.f32 %v1563_v55, %v2563_v7  ;;  %v1566_v39 = vmul.f32 %v1565_v51, %v2550_v19  ;;  %v1569_v29 = vmul.f32 %v1562_v54, %v2560_v1  ;;  %1677 = vmatprep.subr.bf16.mxu1 %v1571_v23 }
 0xb5c   :  { %v1572_v14 = vpack.c.bf16 %v1568_v21, %v1552_v26  ;;  %v1570_v10 = vpack.c.bf16 %v1566_v39, %v1550_v2  ;;  %v1503_v31 = vpop.permute.xlu1 %1502  ;;  %v1505_v38 = vpop.permute.xlu0 %1504  ;;  %v1573_v58 = vpack.c.bf16 %v1569_v29, %v1553_v62 }
 0xb5d   :  { %v1512_v12 = vsel %vm761_vm10, %v1503_v31, %v1505_v38 }
 0xb5e   :  { %1678 = vmatpush1.bf16.msra.mxu1 %v1570_v10  ;;  %1718 = vmatprep.subr.bf16.mxu0 %v1573_v58  ;;  %v1515_v35 = vmul.f32 %v1512_v12, %v2567_v8 }
 0xb5f   :  { %1719 = vmatpush1.bf16.msra.mxu0 %v1572_v14 }
 0xb60   :  { %v1507_v27 = vpop.permute.xlu1 %1506  ;;  %v1509_v41 = vpop.permute.xlu0 %1508 }
 0xb61   :  { %v1511_v19 = vsel %vm761_vm10, %v1505_v38, %v1507_v27  ;;  %v1513_v3 = vsel %vm761_vm10, %v1509_v41, %v1503_v31  ;;  %v1510_v4 = vsel %vm761_vm10, %v1507_v27, %v1509_v41 }
 0xb62   :  { %v1516_v43 = vmul.f32 %v1511_v19, %v2627_v40  ;;  %v1514_v37 = vmul.f32 %v1513_v3, %v2601_v28 }
 0xb64   :  { %v1519_v15 = vpop.permute.xlu1 %1518  ;;  %v1521_v7 = vpop.permute.xlu0 %1520 }
 0xb65   :  { %v1528_v1 = vsel %vm800_vm11, %v1519_v15, %v1521_v7 }
 0xb66   :  { %v1531_v61 = vmul.f32 %v1528_v1, %v2592_v36  ;;  %v1517_v36 = vmul.f32 %v1510_v4, %v2630_v18 }
 0xb68   :  { %v1523_v42 = vpop.permute.xlu1 %1522  ;;  %v1525_v11 = vpop.permute.xlu0 %1524  ;;  %v1535_v50 = vpack.c.bf16 %v1531_v61, %v1515_v35 }
 0xb69   :  { %v1527_v52 = vsel %vm800_vm11, %v1521_v7, %v1523_v42  ;;  %v1526_v8 = vsel %vm800_vm11, %v1523_v42, %v1525_v11  ;;  %v1529_v9 = vsel %vm800_vm11, %v1525_v11, %v1519_v15 }
 0xb6a   :  { %v1532_v46 = vmul.f32 %v1527_v52, %v2639_v33  ;;  %v1530_v40 = vmul.f32 %v1529_v9, %v2604_v57  ;;  %v1533_v59 = vmul.f32 %v1526_v8, %v2644_v25  ;;  %1679 = vmatprep.subr.bf16.mxu1 %v1535_v50 }
 0xb6c   :  { %v1536_v56 = vpack.c.bf16 %v1532_v46, %v1516_v43  ;;  %v1534_v28 = vpack.c.bf16 %v1530_v40, %v1514_v37  ;;  %v1537_v17 = vpack.c.bf16 %v1533_v59, %v1517_v36 }
 0xb6e   :  { %1680 = vmatpush1.bf16.msra.mxu1 %v1534_v28  ;;  %1720 = vmatprep.subr.bf16.mxu0 %v1537_v17 }
 0xb6f   :  { %1721 = vmatpush1.bf16.msra.mxu0 %v1536_v56 }
 0xb71   :  { %1829 = vmatmul.mubr.msk.bf16.vlgmr.msra.gmra.mxu1 %vm317_vm3, %v1501_v44 }
 0xb72   :  { %1831 = vmatmul.mubr.msk.bf16.vlgmr.msra.gmra.mxu0 %vm317_vm3, %v1501_v44 }
 0xc31   :  { %v1699_v32 = vpop.f32.mrf.mxu1 }
 0xc32   :  { %1971 = vtanh.f32 %v1699_v32  ;;  %v1740_v57 = vpop.f32.mrf.mxu0 }
 0xc33   :  { %1973 = vtanh.f32 %v1740_v57  ;;  %v1701_v18 = vpop.f32.mrf.mxu1 }
 0xc34   :  { %1975 = vtanh.f32 %v1701_v18  ;;  %v1742_v33 = vpop.f32.mrf.mxu0 }
 0xc35   :  { %1977 = vtanh.f32 %v1742_v33  ;;  %v1703_v25 = vpop.f32.mrf.mxu1 }
 0xc36   :  { %v1744_v16 = vpop.f32.mrf.mxu0 }
 0xc37   :  { %v1704_v48 = vpop.f32.mrf.mxu1 }
 0xc38   :  { %v1745_v45 = vpop.f32.mrf.mxu0 }
 0xc3f   :  { %v1972_v30 = vpop.eup %1971 }
 0xc40   :  { %v1974_v47 = vpop.eup %1973 }
 0xc41   :  { %v1976_v49 = vpop.eup %1975 }
 0xc42   :  { %v1978_v53 = vpop.eup %1977  ;;  %v1755_v60 = vcombine.low %v1972_v30, %v1976_v49 }
 0xc43   :  { %v1756_v22 = vcombine.low %v1974_v47, %v1978_v53 }
 0xc44   :  { %1759 = vst [vmem:[%s3047_s11] sm:$0x77] %v1755_v60 }
 0xc45   :  { %1760 = vst [vmem:[%s3047_s11 + $0x8] sm:$0x77] %v1756_v22 }
 0xc46   :  { %1765 = vsyncpa [#allocation3], 1 }
 0xc47   :  { %1766 = vsyncpa [#allocation5], 1 }
 0xc48   :  { %1767 = vsyncpa [#allocation8], 1 }

</bundles_post_ra>
